<compile_context>
chip_gen: v7x
topology: tpu7x:2x2x1
jax: 0.10.0
libtpu: 0.0.40
codegen_flags: <defaults>
</compile_context>

<pallas_src>
import functools

import jax
import jax.numpy as jnp
from jax.experimental import pallas as pl
from jax.experimental.pallas import tpu as pltpu


def _round_up(x, m):
    return (x + m - 1) // m * m


def _heads_per_group(n_heads, head_dim):
    """Smallest divisor of n_heads whose lane width (g * head_dim) reaches 128."""
    target = max(1, -(-128 // head_dim))  # ceil(128 / head_dim)
    if target >= n_heads:
        return n_heads
    for g in range(target, n_heads + 1):
        if n_heads % g == 0:
            return g
    return n_heads


def attention_kernel(x_ref, wqkv_ref, bqkv_ref, wproj_ref, bproj_ref, o_ref,
                     acc_ref, *, heads_per_group, head_dim, n_tokens):
    """One grid step == (one batch sample, one group of heads).

    x_ref     : (1, Np, Dp)          padded input tokens (bf16)
    wqkv_ref  : (1, Dp, 3*GW)        this group's fused [Q|K|V] weights (bf16, Q pre-scaled)
    bqkv_ref  : (1, 1, 3*GW)         this group's fused QKV bias (f32, Q pre-scaled)
    wproj_ref : (1, gh, hd, Dp)      this group's per-head output-projection rows (bf16)
    bproj_ref : (1, Dp)              output-projection bias (f32)
    o_ref     : (1, Np, Dp)          padded output tokens
    acc_ref   : (Np, Dp) f32 VMEM    output accumulator across head groups
    """
    g = pl.program_id(1)
    gw = heads_per_group * head_dim
    n_pad = x_ref.shape[1]

    @pl.when(g == 0)
    def _init():
        acc_ref[...] = jnp.zeros_like(acc_ref)

    # ---- fused QKV projection for this head group (wide, MXU-efficient) ----
    x = x_ref[0].astype(jnp.bfloat16)                                 # (Np, Dp)
    qkv = jnp.dot(x, wqkv_ref[0], preferred_element_type=jnp.float32)
    qkv = qkv + bqkv_ref[0]                                           # (Np, 3*GW) f32

    # ---- split into head-major (gh, Np, hd) tensors (no lane concat later) --
    def heads(base):
        return jnp.stack(
            [qkv[:, base + h * head_dim: base + (h + 1) * head_dim]
             for h in range(heads_per_group)], axis=0)

    q = heads(0).astype(jnp.bfloat16)        # softmax scale already folded in
    k = heads(gw).astype(jnp.bfloat16)
    v = heads(2 * gw).astype(jnp.bfloat16)

    # ---- logits: contract head_dim directly (no explicit k transpose) ------
    logits = jnp.einsum('hqc,hkc->hqk', q, k,
                        preferred_element_type=jnp.float32)           # (gh, Np, Np)

    if n_tokens < n_pad:  # static: mask out padded key tokens
        kidx = jax.lax.broadcasted_iota(jnp.int32, logits.shape, 2)
        logits = jnp.where(kidx < n_tokens, logits, -1e30)

    # ---- softmax in float32 (v5e-safe); EUP reciprocal instead of divide ---
    m = jnp.max(logits, axis=-1, keepdims=True)
    p = jnp.exp(logits - m)
    s = jnp.sum(p, axis=-1, keepdims=True)
    attn = p * pl.reciprocal(s, approx=True)     # attn_drop p=0.0 -> identity

    ctx = jnp.einsum('hqk,hkc->hqc', attn.astype(jnp.bfloat16), v,
                     preferred_element_type=jnp.float32)              # (gh, Np, hd)

    # ---- partial output projection for this group's heads, accumulate ------
    part = jnp.einsum('hqc,hcd->hqd', ctx.astype(jnp.bfloat16), wproj_ref[0],
                      preferred_element_type=jnp.float32)             # (gh, Np, Dp)
    acc_ref[...] += jnp.sum(part, axis=0)

    @pl.when(g == pl.num_programs(1) - 1)
    def _finish():
        # proj_drop p=0.0 -> identity
        o_ref[0] = (acc_ref[...] + bproj_ref[...]).astype(o_ref.dtype)


def attention_pallas(x, wqkv, bqkv, wproj, bproj, *, n_heads):
    B, N, dim = x.shape
    assert dim % n_heads == 0
    head_dim = dim // n_heads
    scale = float(head_dim) ** -0.5

    # head grouping: per-group lane width >= 128 when head_dim allows
    gh = _heads_per_group(n_heads, head_dim)
    n_groups = n_heads // gh
    gw = gh * head_dim

    # pad tokens and model dim to lane/sublane-dense multiples of 128
    n_pad = _round_up(N, 128)
    d_pad = _round_up(dim, 128)

    f32 = jnp.float32
    x_p = jnp.zeros((B, n_pad, d_pad), jnp.bfloat16)
    x_p = x_p.at[:, :N, :dim].set(x.astype(jnp.bfloat16))

    # fold the softmax scale into the Q projection (weight + bias), in f32
    wq = wqkv[:, :dim] * scale
    wk = wqkv[:, dim:2 * dim]
    wv = wqkv[:, 2 * dim:]
    bq = bqkv[:, :dim] * scale
    bk = bqkv[:, dim:2 * dim]
    bv = bqkv[:, 2 * dim:]

    def w_groups(w):  # (dim, dim) -> (G, d_pad, GW), zero-padded input rows
        wp_ = jnp.zeros((d_pad, dim), f32).at[:dim, :].set(w)
        return wp_.reshape(d_pad, n_groups, gw).transpose(1, 0, 2)

    def b_groups(b):  # (1, dim) -> (G, 1, GW)
        return b.reshape(n_groups, 1, gw)

    wqkv_g = jnp.concatenate(
        [w_groups(wq), w_groups(wk), w_groups(wv)], axis=-1
    ).astype(jnp.bfloat16)                                     # (G, d_pad, 3*GW)
    bqkv_g = jnp.concatenate(
        [b_groups(bq), b_groups(bk), b_groups(bv)], axis=-1
    ).astype(f32)                                              # (G, 1, 3*GW)

    wproj_p = jnp.zeros((dim, d_pad), f32).at[:, :dim].set(wproj)
    wproj_g = wproj_p.reshape(n_groups, gh, head_dim, d_pad).astype(jnp.bfloat16)
    bproj_p = jnp.zeros((1, d_pad), f32).at[:, :dim].set(bproj)

    kernel = functools.partial(
        attention_kernel, heads_per_group=gh, head_dim=head_dim, n_tokens=N)

    out = pl.pallas_call(
        kernel,
        out_shape=jax.ShapeDtypeStruct((B, n_pad, d_pad), x.dtype),
        grid=(B, n_groups),
        in_specs=[
            pl.BlockSpec((1, n_pad, d_pad), lambda b, g: (b, 0, 0)),        # x (same block across g)
            pl.BlockSpec((1, d_pad, 3 * gw), lambda b, g: (g, 0, 0)),       # fused QKV weights / group
            pl.BlockSpec((1, 1, 3 * gw), lambda b, g: (g, 0, 0)),           # fused QKV bias / group
            pl.BlockSpec((1, gh, head_dim, d_pad), lambda b, g: (g, 0, 0, 0)),  # Wproj rows / group
            pl.BlockSpec((1, d_pad), lambda b, g: (0, 0)),                  # proj bias
        ],
        out_specs=pl.BlockSpec((1, n_pad, d_pad), lambda b, g: (b, 0, 0)),
        scratch_shapes=[pltpu.VMEM((n_pad, d_pad), jnp.float32)],
        compiler_params=pltpu.CompilerParams(
            dimension_semantics=("parallel", "arbitrary"),
            vmem_limit_bytes=32 * 1024 * 1024),
    )(x_p, wqkv_g, bqkv_g, wproj_g, bproj_p)

    return out[:, :N, :dim]


def attention_reference(x, wqkv, bqkv, wproj, bproj, *, n_heads):
    """Pure-JAX (f32) replica of the PyTorch forward, for validation."""
    B, N, dim = x.shape
    head_dim = dim // n_heads
    scale = float(head_dim) ** -0.5

    qkv = x @ wqkv + bqkv[0]                                    # (B, N, 3*dim)
    qkv = qkv.reshape(B, N, 3, n_heads, head_dim)
    qkv = jnp.transpose(qkv, (2, 0, 3, 1, 4))                   # (3, B, H, N, hd)
    q, k, v = qkv[0], qkv[1], qkv[2]
    dp = jnp.einsum("bhnd,bhmd->bhnm", q, k) * scale
    attn = jax.nn.softmax(dp, axis=-1)
    wa = jnp.einsum("bhnm,bhmd->bhnd", attn, v)                 # (B, H, N, hd)
    wa = jnp.transpose(wa, (0, 2, 1, 3)).reshape(B, N, dim)     # merge heads
    return wa @ wproj + bproj[0]


if __name__ == "__main__":
    # Small shapes consistent with the module: batch=2, seq=8, dim=32, heads=4.
    B, N, DIM, HEADS = 2, 8, 32, 4

    key = jax.random.PRNGKey(0)
    kx, kw1, kb1, kw2, kb2 = jax.random.split(key, 5)

    x = jax.random.normal(kx, (B, N, DIM), dtype=jnp.float32)
    wqkv = jax.random.normal(kw1, (DIM, 3 * DIM), dtype=jnp.float32) * 0.05
    bqkv = jax.random.normal(kb1, (1, 3 * DIM), dtype=jnp.float32) * 0.05
    wproj = jax.random.normal(kw2, (DIM, DIM), dtype=jnp.float32) * 0.05
    bproj = jax.random.normal(kb2, (1, DIM), dtype=jnp.float32) * 0.05

    out = attention_pallas(x, wqkv, bqkv, wproj, bproj, n_heads=HEADS)
    out = jax.block_until_ready(out)

    ref = attention_reference(x, wqkv, bqkv, wproj, bproj, n_heads=HEADS)
    assert out.shape == (B, N, DIM)
    # bf16 MXU operands + approx reciprocal => relaxed (but still tight) tolerance
    assert jnp.allclose(out, ref, atol=2e-2, rtol=2e-2), "mismatch vs reference"

    print("KERNEL_OK")
</pallas_src>

<mosaic_0001>
module attributes {stable_mosaic.version = 11 : i64} {
  func.func @attention_kernel(%arg0: i32, %arg1: i32, %arg2: memref<1x128x128xbf16, #tpu.memory_space<vmem>>, %arg3: memref<1x128x96xbf16, #tpu.memory_space<vmem>>, %arg4: memref<1x1x96xf32, #tpu.memory_space<vmem>>, %arg5: memref<1x4x8x128xbf16, #tpu.memory_space<vmem>>, %arg6: memref<1x128xf32, #tpu.memory_space<vmem>>, %arg7: memref<1x128x128xf32, #tpu.memory_space<vmem>>, %arg8: memref<128x128xf32, #tpu.memory_space<vmem>>) attributes {dimension_semantics = [#tpu.dimension_semantics<parallel>, #tpu.dimension_semantics<arbitrary>], iteration_bounds = array<i64: 2, 1>, scalar_prefetch = 0 : i64, scratch_operands = 1 : i64, tpu.core_type = #tpu.core_type<tc>, window_params = [{transform_indices = @transform_0, window_bounds = array<i64: 1, 128, 128>}, {transform_indices = @transform_1, window_bounds = array<i64: 1, 128, 96>}, {transform_indices = @transform_2, window_bounds = array<i64: 1, 1, 96>}, {transform_indices = @transform_3, window_bounds = array<i64: 1, 4, 8, 128>}, {pipeline_mode = #tpu.pipeline_mode<synchronous>, transform_indices = @transform_4, window_bounds = array<i64: 1, 128>}, {transform_indices = @transform_5, window_bounds = array<i64: 1, 128, 128>}]} {
    %c0_i32 = arith.constant 0 : i32
    %0 = arith.cmpi eq, %arg1, %c0_i32 : i32
    %1 = arith.extui %0 : i1 to i32
    %c0_i32_0 = arith.constant 0 : i32
    %2 = arith.cmpi ne, %1, %c0_i32_0 : i32
    scf.if %2 {
      %cst_26 = arith.constant 0.000000e+00 : f32
      %71 = vector.broadcast %cst_26 : f32 to vector<128x128xf32>
      %c0_27 = arith.constant 0 : index
      %c0_28 = arith.constant 0 : index
      %72 = vector.load %arg8[%c0_27, %c0_28] : memref<128x128xf32, #tpu.memory_space<vmem>>, vector<128x128xf32>
      tpu.vector_store %arg8[%c0_27, %c0_28], %71 {strides = array<i32>} : memref<128x128xf32, #tpu.memory_space<vmem>>, vector<128x128xf32>,
    } else {
    }
    %c0 = arith.constant 0 : index
    %c0_1 = arith.constant 0 : index
    %c0_2 = arith.constant 0 : index
    %3 = vector.load %arg2[%c0, %c0_1, %c0_2] : memref<1x128x128xbf16, #tpu.memory_space<vmem>>, vector<1x128x128xbf16>
    %4 = vector.shape_cast %3 : vector<1x128x128xbf16> to vector<128x128xbf16>
    %c0_3 = arith.constant 0 : index
    %c0_4 = arith.constant 0 : index
    %c0_5 = arith.constant 0 : index
    %5 = vector.load %arg3[%c0_3, %c0_4, %c0_5] : memref<1x128x96xbf16, #tpu.memory_space<vmem>>, vector<1x128x96xbf16>
    %6 = vector.shape_cast %5 : vector<1x128x96xbf16> to vector<128x96xbf16>
    %cst = arith.constant dense<0.000000e+00> : vector<128x96xf32>
    %7 = tpu.matmul %4, %6, %cst {dimension_numbers = #tpu.dot_dimension_numbers<[1], [0], [0], [1], [0, 0, 1, 1], [], []>} : vector<128x128xbf16>, vector<128x96xbf16>, vector<128x96xf32> -> vector<128x96xf32>
    %c0_6 = arith.constant 0 : index
    %c0_7 = arith.constant 0 : index
    %c0_8 = arith.constant 0 : index
    %8 = vector.load %arg4[%c0_6, %c0_7, %c0_8] : memref<1x1x96xf32, #tpu.memory_space<vmem>>, vector<1x1x96xf32>
    %9 = vector.shape_cast %8 : vector<1x1x96xf32> to vector<1x96xf32>
    %10 = vector.broadcast %9 : vector<1x96xf32> to vector<128x96xf32>
    %11 = arith.addf %7, %10 : vector<128x96xf32>
    %12 = vector.extract_strided_slice %11 {offsets = [0, 0], sizes = [128, 8], strides = [1, 1]} : vector<128x96xf32> to vector<128x8xf32>
    %13 = vector.extract_strided_slice %11 {offsets = [0, 8], sizes = [128, 8], strides = [1, 1]} : vector<128x96xf32> to vector<128x8xf32>
    %14 = vector.extract_strided_slice %11 {offsets = [0, 16], sizes = [128, 8], strides = [1, 1]} : vector<128x96xf32> to vector<128x8xf32>
    %15 = vector.extract_strided_slice %11 {offsets = [0, 24], sizes = [128, 8], strides = [1, 1]} : vector<128x96xf32> to vector<128x8xf32>
    %16 = vector.shape_cast %12 : vector<128x8xf32> to vector<1x128x8xf32>
    %17 = vector.shape_cast %13 : vector<128x8xf32> to vector<1x128x8xf32>
    %18 = vector.shape_cast %14 : vector<128x8xf32> to vector<1x128x8xf32>
    %19 = vector.shape_cast %15 : vector<128x8xf32> to vector<1x128x8xf32>
    %20 = tpu.concatenate %16, %17, %18, %19 in 0 : vector<1x128x8xf32>, vector<1x128x8xf32>, vector<1x128x8xf32>, vector<1x128x8xf32> -> vector<4x128x8xf32>
    %21 = arith.truncf %20 : vector<4x128x8xf32> to vector<4x128x8xbf16>
    %22 = vector.extract_strided_slice %11 {offsets = [0, 32], sizes = [128, 8], strides = [1, 1]} : vector<128x96xf32> to vector<128x8xf32>
    %23 = vector.extract_strided_slice %11 {offsets = [0, 40], sizes = [128, 8], strides = [1, 1]} : vector<128x96xf32> to vector<128x8xf32>
    %24 = vector.extract_strided_slice %11 {offsets = [0, 48], sizes = [128, 8], strides = [1, 1]} : vector<128x96xf32> to vector<128x8xf32>
    %25 = vector.extract_strided_slice %11 {offsets = [0, 56], sizes = [128, 8], strides = [1, 1]} : vector<128x96xf32> to vector<128x8xf32>
    %26 = vector.shape_cast %22 : vector<128x8xf32> to vector<1x128x8xf32>
    %27 = vector.shape_cast %23 : vector<128x8xf32> to vector<1x128x8xf32>
    %28 = vector.shape_cast %24 : vector<128x8xf32> to vector<1x128x8xf32>
    %29 = vector.shape_cast %25 : vector<128x8xf32> to vector<1x128x8xf32>
    %30 = tpu.concatenate %26, %27, %28, %29 in 0 : vector<1x128x8xf32>, vector<1x128x8xf32>, vector<1x128x8xf32>, vector<1x128x8xf32> -> vector<4x128x8xf32>
    %31 = arith.truncf %30 : vector<4x128x8xf32> to vector<4x128x8xbf16>
    %32 = vector.extract_strided_slice %11 {offsets = [0, 64], sizes = [128, 8], strides = [1, 1]} : vector<128x96xf32> to vector<128x8xf32>
    %33 = vector.extract_strided_slice %11 {offsets = [0, 72], sizes = [128, 8], strides = [1, 1]} : vector<128x96xf32> to vector<128x8xf32>
    %34 = vector.extract_strided_slice %11 {offsets = [0, 80], sizes = [128, 8], strides = [1, 1]} : vector<128x96xf32> to vector<128x8xf32>
    %35 = vector.extract_strided_slice %11 {offsets = [0, 88], sizes = [128, 8], strides = [1, 1]} : vector<128x96xf32> to vector<128x8xf32>
    %36 = vector.shape_cast %32 : vector<128x8xf32> to vector<1x128x8xf32>
    %37 = vector.shape_cast %33 : vector<128x8xf32> to vector<1x128x8xf32>
    %38 = vector.shape_cast %34 : vector<128x8xf32> to vector<1x128x8xf32>
    %39 = vector.shape_cast %35 : vector<128x8xf32> to vector<1x128x8xf32>
    %40 = tpu.concatenate %36, %37, %38, %39 in 0 : vector<1x128x8xf32>, vector<1x128x8xf32>, vector<1x128x8xf32>, vector<1x128x8xf32> -> vector<4x128x8xf32>
    %41 = arith.truncf %40 : vector<4x128x8xf32> to vector<4x128x8xbf16>
    "tpu.trace_start"() <{level = 10 : i32, message = "hqc,hkc->hqk"}> : () -> ()
    %cst_9 = arith.constant dense<0.000000e+00> : vector<4x128x128xf32>
    %42 = tpu.matmul %21, %31, %cst_9 {dimension_numbers = #tpu.dot_dimension_numbers<[2], [2], [1], [1], [0, 0, 0, 1, 1, 1], [0], [0]>} : vector<4x128x8xbf16>, vector<4x128x8xbf16>, vector<4x128x128xf32> -> vector<4x128x128xf32>
    "tpu.trace_stop"() : () -> ()
    %43 = tpu.iota {dimensions = array<i32: 2>} : vector<4x128x128xi32>
    %c8_i32 = arith.constant 8 : i32
    %44 = vector.broadcast %c8_i32 : i32 to vector<4x128x128xi32>
    %45 = arith.cmpi slt, %43, %44 : vector<4x128x128xi32>
    %cst_10 = arith.constant -1.000000e+30 : f32
    %46 = vector.broadcast %cst_10 : f32 to vector<4x128x128xf32>
    %47 = arith.select %45, %42, %46 : vector<4x128x128xi1>, vector<4x128x128xf32>
    %cst_11 = arith.constant dense<0xFF800000> : vector<4x128xf32>
    %48 = vector.multi_reduction <maximumf>, %47, %cst_11 [2] : vector<4x128x128xf32> to vector<4x128xf32>
    %49 = vector.shape_cast %48 : vector<4x128xf32> to vector<4x128x1xf32>
    %50 = vector.broadcast %49 : vector<4x128x1xf32> to vector<4x128x128xf32>
    %51 = arith.subf %47, %50 : vector<4x128x128xf32>
    %52 = math.exp %51 : vector<4x128x128xf32>
    %cst_12 = arith.constant dense<0.000000e+00> : vector<4x128xf32>
    %53 = vector.multi_reduction <add>, %52, %cst_12 [2] : vector<4x128x128xf32> to vector<4x128xf32>
    %54 = vector.shape_cast %53 : vector<4x128xf32> to vector<4x128x1xf32>
    %55 = tpu.reciprocal %54 {approx = true} : vector<4x128x1xf32> -> vector<4x128x1xf32>
    %56 = vector.broadcast %55 : vector<4x128x1xf32> to vector<4x128x128xf32>
    %57 = arith.mulf %52, %56 : vector<4x128x128xf32>
    %58 = arith.truncf %57 : vector<4x128x128xf32> to vector<4x128x128xbf16>
    "tpu.trace_start"() <{level = 10 : i32, message = "hqk,hkc->hqc"}> : () -> ()
    %cst_13 = arith.constant dense<0.000000e+00> : vector<4x128x8xf32>
    %59 = tpu.matmul %58, %41, %cst_13 {dimension_numbers = #tpu.dot_dimension_numbers<[2], [1], [1], [2], [0, 0, 0, 1, 1, 2], [0], [0]>} : vector<4x128x128xbf16>, vector<4x128x8xbf16>, vector<4x128x8xf32> -> vector<4x128x8xf32>
    "tpu.trace_stop"() : () -> ()
    %60 = arith.truncf %59 : vector<4x128x8xf32> to vector<4x128x8xbf16>
    %c0_14 = arith.constant 0 : index
    %c0_15 = arith.constant 0 : index
    %c0_16 = arith.constant 0 : index
    %c0_17 = arith.constant 0 : index
    %61 = vector.load %arg5[%c0_14, %c0_15, %c0_16, %c0_17] : memref<1x4x8x128xbf16, #tpu.memory_space<vmem>>, vector<1x4x8x128xbf16>
    %62 = vector.shape_cast %61 : vector<1x4x8x128xbf16> to vector<4x8x128xbf16>
    "tpu.trace_start"() <{level = 10 : i32, message = "hqc,hcd->hqd"}> : () -> ()
    %cst_18 = arith.constant dense<0.000000e+00> : vector<4x128x128xf32>
    %63 = tpu.matmul %60, %62, %cst_18 {dimension_numbers = #tpu.dot_dimension_numbers<[2], [1], [1], [2], [0, 0, 0, 1, 1, 2], [0], [0]>} : vector<4x128x8xbf16>, vector<4x8x128xbf16>, vector<4x128x128xf32> -> vector<4x128x128xf32>
    "tpu.trace_stop"() : () -> ()
    %c0_19 = arith.constant 0 : index
    %c0_20 = arith.constant 0 : index
    %64 = vector.load %arg8[%c0_19, %c0_20] : memref<128x128xf32, #tpu.memory_space<vmem>>, vector<128x128xf32>
    %cst_21 = arith.constant dense<0.000000e+00> : vector<128x128xf32>
    %65 = vector.multi_reduction <add>, %63, %cst_21 [0] : vector<4x128x128xf32> to vector<128x128xf32>
    %66 = arith.addf %64, %65 : vector<128x128xf32>
    %c0_22 = arith.constant 0 : index
    %c0_23 = arith.constant 0 : index
    %67 = vector.load %arg8[%c0_22, %c0_23] : memref<128x128xf32, #tpu.memory_space<vmem>>, vector<128x128xf32>
    tpu.vector_store %arg8[%c0_22, %c0_23], %66 {strides = array<i32>} : memref<128x128xf32, #tpu.memory_space<vmem>>, vector<128x128xf32>,
    %c0_i32_24 = arith.constant 0 : i32
    %68 = arith.cmpi eq, %arg1, %c0_i32_24 : i32
    %69 = arith.extui %68 : i1 to i32
    %c0_i32_25 = arith.constant 0 : i32
    %70 = arith.cmpi ne, %69, %c0_i32_25 : i32
    scf.if %70 {
      %c0_26 = arith.constant 0 : index
      %c0_27 = arith.constant 0 : index
      %71 = vector.load %arg8[%c0_26, %c0_27] : memref<128x128xf32, #tpu.memory_space<vmem>>, vector<128x128xf32>
      %c0_28 = arith.constant 0 : index
      %c0_29 = arith.constant 0 : index
      %72 = vector.load %arg6[%c0_28, %c0_29] : memref<1x128xf32, #tpu.memory_space<vmem>>, vector<1x128xf32>
      %73 = vector.broadcast %72 : vector<1x128xf32> to vector<128x128xf32>
      %74 = arith.addf %71, %73 : vector<128x128xf32>
      %c0_30 = arith.constant 0 : index
      %c0_31 = arith.constant 0 : index
      %c0_32 = arith.constant 0 : index
      %75 = vector.load %arg7[%c0_30, %c0_31, %c0_32] : memref<1x128x128xf32, #tpu.memory_space<vmem>>, vector<1x128x128xf32>
      %76 = vector.shape_cast %75 : vector<1x128x128xf32> to vector<128x128xf32>
      %77 = vector.shape_cast %74 : vector<128x128xf32> to vector<1x128x128xf32>
      tpu.vector_store %arg7[%c0_30, %c0_31, %c0_32], %77 {strides = array<i32>} : memref<1x128x128xf32, #tpu.memory_space<vmem>>, vector<1x128x128xf32>,
    } else {
    }
    return
  }
  func.func @transform_0(%arg0: i32, %arg1: i32) -> (i32, i32, i32) {
    %c0_i32 = arith.constant 0 : i32
    %c0_i32_0 = arith.constant 0 : i32
    %c0_i32_1 = arith.constant 0 : i32
    return %arg0, %c0_i32, %c0_i32_0 : i32, i32, i32
  }
  func.func @transform_1(%arg0: i32, %arg1: i32) -> (i32, i32, i32) {
    %c0_i32 = arith.constant 0 : i32
    %c0_i32_0 = arith.constant 0 : i32
    %c0_i32_1 = arith.constant 0 : i32
    return %arg1, %c0_i32, %c0_i32_0 : i32, i32, i32
  }
  func.func @transform_2(%arg0: i32, %arg1: i32) -> (i32, i32, i32) {
    %c0_i32 = arith.constant 0 : i32
    %c0_i32_0 = arith.constant 0 : i32
    %c0_i32_1 = arith.constant 0 : i32
    return %arg1, %c0_i32, %c0_i32_0 : i32, i32, i32
  }
  func.func @transform_3(%arg0: i32, %arg1: i32) -> (i32, i32, i32, i32) {
    %c0_i32 = arith.constant 0 : i32
    %c0_i32_0 = arith.constant 0 : i32
    %c0_i32_1 = arith.constant 0 : i32
    %c0_i32_2 = arith.constant 0 : i32
    return %arg1, %c0_i32, %c0_i32_0, %c0_i32_1 : i32, i32, i32, i32
  }
  func.func @transform_4(%arg0: i32, %arg1: i32) -> (i32, i32) {
    %c0_i32 = arith.constant 0 : i32
    %c0_i32_0 = arith.constant 0 : i32
    %c0_i32_1 = arith.constant 0 : i32
    return %c0_i32, %c0_i32_0 : i32, i32
  }
  func.func @transform_5(%arg0: i32, %arg1: i32) -> (i32, i32, i32) {
    %c0_i32 = arith.constant 0 : i32
    %c0_i32_0 = arith.constant 0 : i32
    %c0_i32_1 = arith.constant 0 : i32
    return %arg0, %c0_i32, %c0_i32_0 : i32, i32, i32
  }
}

</mosaic_0001>

<bundles_post_ra>
// kernel: tpu_custom_call.1
= control target key start
LH: loop header
LB: loop body
LE: loop exit
PB: predicated region body
PF: predicated region fallthrough
CT: control target
= control target key end

     0   :  { %10 = vsyncpa [#allocation4], 0  ;;  %s6406_s0 = inlined_call_operand.hbm [shape: bf16[2,128,128], index: 0, kind: input, shape index: {}]   ;;  %s6407_s1 = inlined_call_operand.vmem [shape: bf16[1,128,96], index: 1, kind: input, shape index: {}]   ;;  %s6408_s2 = inlined_call_operand.vmem [shape: f32[1,1,96], index: 2, kind: input, shape index: {}]   ;;  %s6409_s3 = inlined_call_operand.vmem [shape: bf16[1,4,8,128], index: 3, kind: input, shape index: {}]   ;;  %s6410_s4 = inlined_call_operand.vmem [shape: f32[1,128], index: 4, kind: input, shape index: {}]   ;;  %s6411_s5 = inlined_call_operand.hbm [shape: f32[2,128,128], index: 5, kind: output, shape index: {}]  }
   0x1   :  { %12 = vsyncpa [#allocation4 + $0x1], 0 }
   0x2   :  { %13 = vsyncpa [#allocation5], 0 }
   0x3   :  { %15 = vsyncpa [#allocation5 + $0x1], 0  ;;  %s4774_s18 = smov 0   ;;  %s4776_s19 = smov 0  }
   0x4   :  { %s4778_s20 = smov 0   ;;  %s4780_s21 = smov 0  }
   0x5   :  { %s4782_s22 = smov 0   ;;  %s4784_s23 = smov 0  }
   0x6 LB: > { %s3414_s24 = sadd.s32 4294967295, %s4731_s23   ;;  %s3415_s25 = sadd.s32 4294967294, %s4731_s23   ;;  %s4731_s23 = sphi %s4784_s23, %s21_s23   ;;  %s4727_s22 = sphi %s4782_s22, %s6544_s22   ;;  %s4723_s21 = sphi %s4780_s21, %s6543_s21   ;;  %s4719_s20 = sphi %s4778_s20, %s6542_s20   ;;  %s4715_s19 = sphi %s4776_s19, %s6541_s19   ;;  %s4711_s18 = sphi %s4774_s18, %s6540_s18  }
   0x7   : > { %s33_s26 = sadd.s32 1, %s4727_s22  ;;  %s40_s27 = sadd.s32 1, %s4719_s20 }
   0x8   : > { %p35_p0 = scmp.ge.s32.totalorder %s33_s26, 2  ;;  %p47_p1 = scmp.ne.s32.totalorder %s4719_s20, %s4715_s19 }
   0x9   : > { %p48_p2 = scmp.eq.s32.totalorder %s4731_s23, 0  ;;  %p53_p3 = scmp.ne.s32.totalorder %s4715_s19, %s4711_s18 }
   0xa   : > { %s6546_s26 = smov (%p35_p0, %s33_s26), 0  ;;  %p54_p5 = scmp.eq.s32.totalorder %s3414_s24, 0 }
   0xb   : > { %p4815_p4 = por %p48_p2, %p47_p1  ;;  %s37_s29 = ssub.s32 %s4727_s22, %s6546_s26 }
   0xc   : > { %p176_p6 = scmp.eq.s32.totalorder %s3414_s24, 1  ;;  %p38_p7 = scmp.eq.s32.totalorder %s37_s29, 0 }
   0xd   : > { %p4821_p8 = por %p54_p5, %p53_p3  ;;  %p182_p10 = scmp.eq.s32.totalorder %s3415_s25, 1 }
   0xe   : > { %p4825_p9 = por %p176_p6, %p47_p1  ;;  %p4168_p13 = scmp.lt.s32.totalorder %s4731_s23, 2 }
   0xf   : > { %s4830_s7 = scalar_select %p38_p7, %s4719_s20, %s40_s27  }
  0x10   : > { %s6455_s6 = scalar_select %p4825_p9, 1, 0 }
  0x11   : > { %p4832_p11 = por %p182_p10, %p53_p3  ;;  %s227_s9 = sand.u32 1, %s4719_s20  }
  0x12   : > { %s3421_s10 = sshll.u32 %s227_s9, 6  ;;  %s3514_s11 = sshll.u32 %s4727_s22, 10 }
  0x13   : > { %s6456_s8 = scalar_select %p4832_p11, 1, 0 }
  0x14   : > { %s4843_s14 = scalar_lea.hbm %s6406_s0, %s3514_s11  ;;  %s231_s15 = scalar_lea.vmem [#allocation3], %s3421_s10 }
  0x15   : > { %s238_s16 = sshll.u32 %s231_s15, 4  ;;  %p4849_p0 = pnand %p4168_p13, %p4815_p4  ;;  %s4845_s16 = int_to_ptr.vmem [resolvable:$true] %s238_s16 }
  0x16   : > { %s4854_s24 = scalar_lea.sflag [#allocation4], %s227_s9  ;;  %s4619_s25 = scalar_lea.hbm %s4843_s14, 1024 }
  0x17   : > { %p4620_p2 = scmp.ne.s32.totalorder %s4843_s14, %s4619_s25  ;;  %p4621_p3 = pneg %p4849_p0 }
  0x18   : > { %s4624_s28 = scalar_lea.hbm %s6406_s0, 2048  ;;  %p4625_p4 = scmp.lt.u32.totalorder %s4843_s14, %s6406_s0 }
  0x19   : > { %p4622_p5 = pnand %p4621_p3, %p4620_p2  ;;  %p4626_p7 = scmp.lt.u32.totalorder %s4624_s28, %s4619_s25 }
  0x1a   : > { %p4628_p13 = scmp.lt.u32.totalorder %s4619_s25, %s4843_s14 }
  0x1b   : > { %p4623_p6 = pneg %p4622_p5  ;;  %p4627_p10 = por %p4626_p7, %p4625_p4 }
  0x1d   : > { %p4629_p12 = por %p4628_p13, %p4627_p10 }
  0x1f   : > { %p4630_p1 = pnand %p4629_p12, %p4623_p6 }
  0x21   : > { %4633 = shalt.err (!%p4630_p1)
}
  0x22   : > { %s4634_s9 = scalar_lea.vmem %s4845_s16, 1024  ;;  %s4733_s12 = smov [#allocation3]  }
  0x23   : > { %p4635_p2 = scmp.ne.s32.totalorder %s4845_s16, %s4634_s9  ;;  %s4639_s13 = sshll.u32 %s4733_s12, 4  ;;  %s4640_s13 = int_to_ptr.vmem [resolvable:$false] %s4639_s13 }
  0x24   : > { %s4641_s15 = scalar_lea.vmem %s4640_s13, 2048  ;;  %p4642_p9 = scmp.lt.s32.totalorder %s4845_s16, %s4640_s13 }
  0x25   : > { %p4637_p5 = pnand %p4635_p2, %p4621_p3  ;;  %p4643_p4 = scmp.lt.s32.totalorder %s4641_s15, %s4634_s9 }
  0x27   : > { %p4638_p11 = pneg %p4637_p5  ;;  %p4644_p7 = por %p4643_p4, %p4642_p9 }
  0x29   : > { %p4645_p10 = pnand %p4644_p7, %p4638_p11 }
  0x2b   : > { %4648 = shalt.err (!%p4645_p10)
}
  0x2c   : > { %s4734_s25 = smov 64   ;;  %s4735_s27 = smov 4  }
  0x2d   : > { %4163 = dma.hbm_to_vmem [thread:$0]  (!%p4849_p0), %s4843_s14, 1024, %s4845_s16, %s4854_s24, %s4734_s25, %s4734_s25, %s4735_s27  }
  0x2e   : > { %p246_p12 = scmp.lt.s32.totalorder %s4731_s23, 3  ;;  %p6458_p1 = scmp.ge.s32.totalorder %s4731_s23, 1 }
  0x30   : > { %p247_p3 = pnand %p6458_p1, %p246_p12 }
  0x32   : > { %250 = sbr.rel (%p247_p3) target bundleno = 1954 (0x7a2), region = 40 }
  0x39   : > { %s4886_s29 = sand.u32 1, %s4715_s19  }
  0x3a   : > { %s3425_s28 = sshll.u32 %s4886_s29, 6  ;;  %s253_s10 = scalar_lea.sflag [#allocation4], %s4886_s29 }
  0x3b   : > { %s4890_s11 = scalar_lea.vmem [#allocation3], %s3425_s28 }
  0x3c   : > { %4702 = dma.done.wait (%p4821_p8), %s253_s10, 1024  }
  0x3d   : > { %4704 = vsyncadd (%p4821_p8), %s253_s10, 4294966272  ;;  %v4347_v0 = vld [vmem:[%s6407_s1] sm:$0xff]   ;;  %v4348_v1 = vld [vmem:[%s6407_s1 + $0x8] sm:$0xff]   ;;  %vm778_vm0 = vcmask 64512   ;;  %s4737_s12 = smov 120   ;;  %s4738_s13 = smov 112  }
  0x3e   : > { %3696 = vmatprep.subr.bf16.mxu0 %v4347_v0  ;;  %v4349_v2 = vld [vmem:[%s6407_s1 + $0x10] sm:$0xff]   ;;  %v4350_v3 = vld [vmem:[%s6407_s1 + $0x18] sm:$0xff]   ;;  %v4355_v4 = vld [vmem:[%s4890_s11] sm:$0xff]   ;;  %s4739_s30 = smov 104   ;;  %s4740_s15 = smov 64   ;;  %vm2650_vm2 = vcmask 1043456  }
  0x3f   : > { %3697 = vmatpush3.bf16.msra.mxu0 %v4347_v0  ;;  %3712 = vmatprep.mubr.bf16.mxu0 %v4355_v4  ;;  %v4351_v5 = vld [vmem:[%s6407_s1 + $0x20] sm:$0xff]   ;;  %v4352_v6 = vld [vmem:[%s6407_s1 + $0x28] sm:$0xff]   ;;  %v4353_v7 = vld [vmem:[%s6407_s1 + $0x30] sm:$0xff]   ;;  %s3426_s9 = sshll.u32 %s4886_s29, 7  ;;  %p6537_p9 = scmp.ne.s32.totalorder %s6455_s6, 0 }
  0x40   : > { %3698 = vmatprep.subr.bf16.mxu0 %v4348_v1  ;;  %v4354_v8 = vld [vmem:[%s6407_s1 + $0x38] sm:$0xff]   ;;  %v4356_v9 = vld [vmem:[%s4890_s11 + $0x8] sm:$0xff]   ;;  %v4357_v10 = vld [vmem:[%s4890_s11 + $0x10] sm:$0xff]   ;;  %s4741_s14 = smov [#allocation6]  }
  0x41   : > { %v4358_v11 = vld [vmem:[%s4890_s11 + $0x18] sm:$0xff]   ;;  %v4359_v12 = vld [vmem:[%s4890_s11 + $0x20] sm:$0xff]   ;;  %v4360_v13 = vld [vmem:[%s4890_s11 + $0x28] sm:$0xff]   ;;  %s4653_s16 = sshll.u32 %s4741_s14, 4  ;;  %s4654_s16 = int_to_ptr.vmem [resolvable:$false] %s4653_s16 }
  0x42   : > { %v4361_v14 = vld [vmem:[%s4890_s11 + $0x30] sm:$0xff]   ;;  %v4362_v15 = vld [vmem:[%s4890_s11 + $0x38] sm:$0xff]   ;;  %v3427_v17 = vld [vmem:[%s6408_s2] ss:$0 sm:$0xff]  ;;  %s4736_s11 = smov 96   ;;  %s4655_s17 = scalar_lea.vmem %s4654_s16, 4096 }
  0x43   : > { %3699 = vmatpush3.bf16.msra.mxu0 %v4348_v1 }
  0x44   : > { %3700 = vmatprep.subr.bf16.mxu0 %v4349_v2 }
  0x47   : > { %3701 = vmatpush3.bf16.msra.mxu0 %v4349_v2 }
  0x48   : > { %3702 = vmatprep.subr.bf16.mxu0 %v4350_v3 }
  0x4b   : > { %3703 = vmatpush3.bf16.msra.mxu0 %v4350_v3 }
  0x4c   : > { %3704 = vmatprep.subr.bf16.mxu0 %v4351_v5 }
  0x4f   : > { %3705 = vmatpush3.bf16.msra.mxu0 %v4351_v5 }
  0x50   : > { %3706 = vmatprep.subr.bf16.mxu0 %v4352_v6 }
  0x53   : > { %3707 = vmatpush3.bf16.msra.mxu0 %v4352_v6 }
  0x54   : > { %3708 = vmatprep.subr.bf16.mxu0 %v4353_v7 }
  0x57   : > { %3709 = vmatpush3.bf16.msra.mxu0 %v4353_v7 }
  0x58   : > { %3710 = vmatprep.subr.bf16.mxu0 %v4354_v8 }
  0x5b   : > { %3711 = vmatpush3.bf16.msra.mxu0 %v4354_v8 }
  0x5e   : > { %3713 = vmatmul.mubr.bf16.vlgmr.msra.gmra.mrb[0].mxu0 %v4356_v9 }
  0x5f   : > { %3716 = vmatprep.mubr.bf16.mxu0 %v4357_v10 }
  0x66   : > { %3717 = vmatmul.mubr.bf16.gmra.mrb[4].mxu0 %v4358_v11 }
  0x67   : > { %3720 = vmatprep.mubr.bf16.mxu0 %v4359_v12 }
  0x6e   : > { %3721 = vmatmul.mubr.bf16.gmra.mrb[8].mxu0 %v4360_v13 }
  0x6f   : > { %3724 = vmatprep.mubr.bf16.mxu0 %v4361_v14 }
  0x76   : > { %3725 = vmatmul.mubr.bf16.gmra.mrb[12].mxu0 %v4362_v15 }
 0x131   : > { %v3714_v16 = vpop.f32.mrb[0].mxu0 }
 0x132   : > { %v499_v18 = vpop.f32.mrb[1].mxu0  ;;  %v508_v20 = vadd.f32 %v3714_v16, %v3427_v17 }
 0x133   : > { %v3715_v19 = vpop.f32.mrb[2].mxu0  ;;  %v500_v23 = vadd.f32 %v3427_v17, %v499_v18 }
 0x134   : > { %v511_v21 = vadd.f32 %v3715_v19, %v3427_v17  ;;  %v502_v22 = vpop.f32.mrb[3].mxu0 }
 0x135   : > { %v503_v24 = vadd.f32 %v3427_v17, %v502_v22 }
 0x136   : > { %v4931_v25 = vpack.c.bf16 %v511_v21, %v508_v20  ;;  %v4933_v26 = vpack.i.bf16 %v511_v21, %v508_v20 }
 0x137   : > { %v4935_v27 = vpack.c.bf16 %v503_v24, %v500_v23  ;;  %v4227_v28 = vpack.i.bf16 %v503_v24, %v500_v23 }
 0x138   : > { %764 = vrot.lane.b32.xlu1 %v4931_v25, %s4736_s11 }
 0x139   : > { %v3718_v29 = vpop.f32.mrb[4].mxu0  ;;  %762 = vrot.lane.b32.xlu0 %v4935_v27, %s4736_s11  ;;  %3744 = vmatprep.mubr.msk.bf16.mxu0 %vm778_vm0, %v4935_v27 }
 0x13a   : > { %v524_v30 = vadd.f32 %v3718_v29, %v3427_v17  ;;  %v515_v31 = vpop.f32.mrb[5].mxu0 }
 0x13b   : > { %v516_v32 = vadd.f32 %v3427_v17, %v515_v31  ;;  %v3719_v33 = vpop.f32.mrb[6].mxu0 }
 0x13c   : > { %v527_v34 = vadd.f32 %v3719_v33, %v3427_v17  ;;  %4233 = vrot.lane.b32.xlu1 %v4933_v26, %s4737_s12  ;;  %v518_v35 = vpop.f32.mrb[7].mxu0 }
 0x13d   : > { %v519_v36 = vadd.f32 %v3427_v17, %v518_v35  ;;  %4228 = vrot.lane.b32.xlu0 %v4227_v28, %s4737_s12 }
 0x13e   : > { %v4946_v37 = vpack.i.bf16 %v527_v34, %v524_v30  ;;  %v4948_v38 = vpack.c.bf16 %v527_v34, %v524_v30 }
 0x13f   : > { %v4237_v39 = vpack.i.bf16 %v519_v36, %v516_v32  ;;  %v4950_v40 = vpack.c.bf16 %v519_v36, %v516_v32 }
 0x141   : > { %v3722_v41 = vpop.f32.mrb[8].mxu0  ;;  %4238 = vrot.lane.b32.xlu1 %v4237_v39, %s4737_s12  ;;  %766 = vrot.lane.b32.xlu0 %v4950_v40, %s4736_s11 }
 0x142   : > { %v540_v42 = vadd.f32 %v3722_v41, %v3427_v17  ;;  %v531_v43 = vpop.f32.mrb[9].mxu0 }
 0x143   : > { %v532_v44 = vadd.f32 %v3427_v17, %v531_v43  ;;  %v3723_v45 = vpop.f32.mrb[10].mxu0 }
 0x144   : > { %v543_v46 = vadd.f32 %v3723_v45, %v3427_v17  ;;  %v534_v47 = vpop.f32.mrb[11].mxu0 }
 0x145   : > { %v535_v48 = vadd.f32 %v3427_v17, %v534_v47  ;;  %4243 = vrot.lane.b32.xlu1 %v4946_v37, %s4737_s12  ;;  %768 = vrot.lane.b32.xlu0 %v4948_v38, %s4736_s11 }
 0x146   : > { %v4959_v49 = vpack.c.bf16 %v543_v46, %v540_v42  ;;  %v4961_v50 = vpack.i.bf16 %v543_v46, %v540_v42 }
 0x147   : > { %v4963_v51 = vpack.i.bf16 %v535_v48, %v532_v44  ;;  %v4965_v52 = vpack.c.bf16 %v535_v48, %v532_v44 }
 0x149   : > { %4253 = vrot.lane.b32.xlu1 %v4963_v51, %s4737_s12  ;;  %4248 = vrot.lane.b32.xlu0 %v4227_v28, %s4738_s13  ;;  %v3726_v53 = vpop.f32.mrb[12].mxu0 }
 0x14a   : > { %v556_v54 = vadd.f32 %v3726_v53, %v3427_v17  ;;  %v547_v55 = vpop.f32.mrb[13].mxu0 }
 0x14b   : > { %v548_v56 = vadd.f32 %v3427_v17, %v547_v55  ;;  %v3727_v57 = vpop.f32.mrb[14].mxu0 }
 0x14c   : > { %v559_v58 = vadd.f32 %v3727_v57, %v3427_v17  ;;  %v550_v59 = vpop.f32.mrb[15].mxu0 }
 0x14d   : > { %772 = vrot.lane.b32.xlu1 %v4959_v49, %s4736_s11  ;;  %770 = vrot.lane.b32.xlu0 %v4965_v52, %s4736_s11  ;;  %v551_v60 = vadd.f32 %v3427_v17, %v550_v59 }
 0x14e   : > { %v4974_v61 = vpack.i.bf16 %v559_v58, %v556_v54  ;;  %v4976_v62 = vpack.c.bf16 %v559_v58, %v556_v54 }
 0x14f   : > { %v4978_v63 = vpack.c.bf16 %v551_v60, %v548_v56  ;;  %v4980_v0 = vpack.i.bf16 %v551_v60, %v548_v56 }
 0x151   : > { %4263 = vrot.lane.b32.xlu1 %v4933_v26, %s4738_s13  ;;  %4258 = vrot.lane.b32.xlu0 %v4961_v50, %s4737_s12 }
 0x155   : > { %4268 = vrot.lane.b32.xlu0 %v4237_v39, %s4738_s13  ;;  %4278 = vrot.lane.b32.xlu1 %v4980_v0, %s4737_s12 }
 0x159   : > { %4273 = vrot.lane.b32.xlu0 %v4974_v61, %s4737_s12  ;;  %776 = vrot.lane.b32.xlu1 %v4976_v62, %s4736_s11 }
 0x15d   : > { %774 = vrot.lane.b32.xlu0 %v4978_v63, %s4736_s11  ;;  %4283 = vrot.lane.b32.xlu1 %v4946_v37, %s4738_s13 }
 0x161   : > { %4293 = vrot.lane.b32.xlu0 %v4227_v28, %s4739_s30  ;;  %4288 = vrot.lane.b32.xlu1 %v4963_v51, %s4738_s13 }
 0x165   : > { %4298 = vrot.lane.b32.xlu0 %v4961_v50, %s4738_s13 }
 0x169   : > { %4313 = vrot.lane.b32.xlu0 %v4237_v39, %s4739_s30 }
 0x1aa   : > { %v765_v1 = vpop.permute.xlu1 %764 }
 0x1ab   : > { %v763_v2 = vpop.permute.xlu0 %762  ;;  %v807_v14 = vsel %vm778_vm0, %v765_v1, 0 }
 0x1ac   : > { %4120 = vmatprep.subr.msk.bf16.mxu0 %vm778_vm0, %v763_v2  ;;  %v804_v3 = vsel %vm778_vm0, %v763_v2, 0 }
 0x1ad   : > { %3729 = vmatpush3.bf16.xpose.msra.mxu0 %v804_v3 }
 0x1ae   : > { %v4234_v4 = vpop.permute.xlu1 %4233  ;;  %4121 = vmatprep.subr.msk.bf16.mxu0 %vm778_vm0, %v765_v1 }
 0x1af   : > { %v4236_v5 = vunpack.i.h.bf16 %v4234_v4  ;;  %v4235_v6 = vunpack.i.l.bf16 %v4234_v4  ;;  %v4229_v7 = vpop.permute.xlu0 %4228 }
 0x1b0   : > { %v4231_v8 = vunpack.i.h.bf16 %v4229_v7  ;;  %v4230_v9 = vunpack.i.l.bf16 %v4229_v7 }
 0x1b1   : > { %v5006_v10 = vpack.c.bf16 %v4236_v5, %v4235_v6 }
 0x1b2   : > { %v5008_v11 = vpack.c.bf16 %v4231_v8, %v4230_v9 }
 0x1b3   : > { %934 = vrot.lane.b32.xlu1 %v5006_v10, %s4736_s11  ;;  %v4239_v12 = vpop.permute.xlu1 %4238  ;;  %v767_v13 = vpop.permute.xlu0 %766 }
 0x1b4   : > { %932 = vrot.lane.b32.xlu0 %v5008_v11, %s4736_s11  ;;  %v810_v19 = vsel %vm778_vm0, %v767_v13, 0  ;;  %v4241_v31 = vunpack.i.h.bf16 %v4239_v12  ;;  %v4240_v32 = vunpack.i.l.bf16 %v4239_v12 }
 0x1b5   : > { %3731 = vmatpush3.bf16.xpose.msra.mxu0 %v807_v14 }
 0x1b6   : > { %4122 = vmatprep.subr.msk.bf16.mxu0 %vm778_vm0, %v767_v13 }
 0x1b7   : > { %4303 = vrot.lane.b32.xlu1 %v4933_v26, %s4739_s30  ;;  %v4244_v15 = vpop.permute.xlu1 %4243  ;;  %v769_v16 = vpop.permute.xlu0 %768 }
 0x1b8   : > { %v4246_v17 = vunpack.i.h.bf16 %v4244_v15  ;;  %v4245_v18 = vunpack.i.l.bf16 %v4244_v15  ;;  %4318 = vrot.lane.b32.xlu0 %v4974_v61, %s4738_s13  ;;  %v813_v30 = vsel %vm778_vm0, %v769_v16, 0 }
 0x1ba   : > { %v5023_v22 = vpack.c.bf16 %v4246_v17, %v4245_v18 }
 0x1bb   : > { %4308 = vrot.lane.b32.xlu1 %v4980_v0, %s4738_s13  ;;  %v4254_v20 = vpop.permute.xlu1 %4253  ;;  %v4249_v21 = vpop.permute.xlu0 %4248  ;;  %s6332_s13 = scalar_lea.vmem [#allocation6], %s3426_s9 }
 0x1bc   : > { %v4251_v23 = vunpack.i.h.bf16 %v4249_v21  ;;  %v4250_v24 = vunpack.i.l.bf16 %v4249_v21  ;;  %4328 = vrot.lane.b32.xlu0 %v4963_v51, %s4739_s30  ;;  %v4256_v59 = vunpack.i.h.bf16 %v4254_v20  ;;  %v4255_v60 = vunpack.i.l.bf16 %v4254_v20 }
 0x1bd   : > { %3733 = vmatpush3.bf16.xpose.msra.mxu0 %v810_v19 }
 0x1be   : > { %v5027_v26 = vpack.c.bf16 %v4251_v23, %v4250_v24  ;;  %4123 = vmatprep.subr.msk.bf16.mxu0 %vm778_vm0, %v769_v16  ;;  %v5071_v9 = vpack.c.bf16 %v4256_v59, %v4255_v60 }
 0x1bf   : > { %v773_v28 = vpop.permute.xlu1 %772  ;;  %938 = vrot.lane.b32.xlu1 %v5023_v22, %s4736_s11  ;;  %v771_v29 = vpop.permute.xlu0 %770 }
 0x1c0   : > { %3808 = vmatprep.mubr.msk.bf16.mxu1 %vm778_vm0, %v5027_v26  ;;  %v816_v46 = vsel %vm778_vm0, %v771_v29, 0  ;;  %v819_v3 = vsel %vm778_vm0, %v773_v28, 0 }
 0x1c3   : > { %v4264_v33 = vpop.permute.xlu1 %4263  ;;  %4323 = vrot.lane.b32.xlu1 %v4946_v37, %s4739_s30  ;;  %v4259_v34 = vpop.permute.xlu0 %4258  ;;  %v5048_v37 = vpack.c.bf16 %v4241_v31, %v4240_v32 }
 0x1c4   : > { %v4266_v35 = vunpack.i.h.bf16 %v4264_v33  ;;  %v4265_v36 = vunpack.i.l.bf16 %v4264_v33  ;;  %v4261_v39 = vunpack.i.h.bf16 %v4259_v34  ;;  %v4260_v41 = vunpack.i.l.bf16 %v4259_v34 }
 0x1c5   : > { %3735 = vmatpush3.bf16.xpose.msra.mxu0 %v813_v30 }
 0x1c6   : > { %v5037_v42 = vpack.c.bf16 %v4266_v35, %v4265_v36  ;;  %4124 = vmatprep.subr.msk.bf16.mxu0 %vm778_vm0, %v771_v29  ;;  %v5042_v44 = vpack.c.bf16 %v4261_v39, %v4260_v41 }
 0x1c7   : > { %v4269_v43 = vpop.permute.xlu0 %4268  ;;  %1101 = vrot.lane.b32.xlu1 %v5027_v26, %s4736_s11  ;;  %v5044_v45 = vpop.permute.xlu1 %4278 }
 0x1c8   : > { %1103 = vrot.lane.b32.xlu0 %v5037_v42, %s4736_s11  ;;  %v4271_v47 = vunpack.i.h.bf16 %v4269_v43  ;;  %v4270_v48 = vunpack.i.l.bf16 %v4269_v43 }
 0x1ca   : > { %v5058_v57 = vpack.c.bf16 %v4271_v47, %v4270_v48 }
 0x1cb   : > { %v4274_v51 = vpop.permute.xlu0 %4273  ;;  %942 = vrot.lane.b32.xlu1 %v5042_v44, %s4736_s11  ;;  %v777_v53 = vpop.permute.xlu1 %776 }
 0x1cc   : > { %936 = vrot.lane.b32.xlu0 %v5048_v37, %s4736_s11  ;;  %v4276_v54 = vunpack.i.h.bf16 %v4274_v51  ;;  %v4275_v55 = vunpack.i.l.bf16 %v4274_v51  ;;  %v825_v20 = vsel %vm778_vm0, %v777_v53, 0 }
 0x1cd   : > { %3737 = vmatpush3.bf16.xpose.msra.mxu0 %v816_v46 }
 0x1ce   : > { %4125 = vmatprep.subr.msk.bf16.mxu0 %vm778_vm0, %v773_v28  ;;  %v5067_v6 = vpack.c.bf16 %v4276_v54, %v4275_v55  ;;  %v4281_v54 = vunpack.i.h.bf16 %v5044_v45  ;;  %v4280_v55 = vunpack.i.l.bf16 %v5044_v45 }
 0x1cf   : > { %v775_v56 = vpop.permute.xlu0 %774  ;;  %4333 = vrot.lane.b32.xlu1 %v4961_v50, %s4739_s30  ;;  %v4284_v58 = vpop.permute.xlu1 %4283 }
 0x1d0   : > { %4338 = vrot.lane.b32.xlu0 %v4980_v0, %s4739_s30  ;;  %v4286_v1 = vunpack.i.h.bf16 %v4284_v58  ;;  %v4285_v2 = vunpack.i.l.bf16 %v4284_v58  ;;  %v822_v17 = vsel %vm778_vm0, %v775_v56, 0 }
 0x1d2   : > { %v5063_v4 = vpack.c.bf16 %v4286_v1, %v4285_v2 }
 0x1d3   : > { %v4294_v5 = vpop.permute.xlu0 %4293  ;;  %1105 = vrot.lane.b32.xlu1 %v5058_v57, %s4736_s11  ;;  %v4289_v50 = vpop.permute.xlu1 %4288 }
 0x1d4   : > { %1107 = vrot.lane.b32.xlu0 %v5063_v4, %s4736_s11  ;;  %v4291_v7 = vunpack.i.h.bf16 %v4289_v50  ;;  %v4290_v8 = vunpack.i.l.bf16 %v4289_v50  ;;  %v4296_v15 = vunpack.i.h.bf16 %v4294_v5  ;;  %v4295_v16 = vunpack.i.l.bf16 %v4294_v5 }
 0x1d5   : > { %3739 = vmatpush3.bf16.xpose.msra.mxu0 %v819_v3  ;;  %v5137_v3 = vpack.c.bf16 %v4281_v54, %v4280_v55  ;;  %v1431_v54 = vlaneseq }
 0x1d6   : > { %4126 = vmatprep.subr.msk.bf16.mxu0 %vm778_vm0, %v775_v56  ;;  %v5078_v14 = vpack.c.bf16 %v4291_v7, %v4290_v8  ;;  %v5087_v19 = vpack.c.bf16 %v4296_v15, %v4295_v16 }
 0x1d7   : > { %946 = vrot.lane.b32.xlu1 %v5067_v6, %s4736_s11  ;;  %v4299_v0 = vpop.permute.xlu0 %4298 }
 0x1d8   : > { %v4301_v12 = vunpack.i.h.bf16 %v4299_v0  ;;  %v4300_v13 = vunpack.i.l.bf16 %v4299_v0  ;;  %940 = vrot.lane.b32.xlu0 %v5071_v9, %s4736_s11 }
 0x1da   : > { %v5085_v18 = vpack.c.bf16 %v4301_v12, %v4300_v13 }
 0x1db   : > { %4343 = vrot.lane.b32.xlu1 %v4974_v61, %s4739_s30  ;;  %v4314_v61 = vpop.permute.xlu0 %4313  ;;  %s3515_s30 = sshll.u32 %s4723_s21, 11  ;;  %s3278_s21 = scalar_lea.sflag [#allocation5], %s4886_s29 }
 0x1dc   : > { %1109 = vrot.lane.b32.xlu0 %v5078_v14, %s4736_s11  ;;  %v4316_v32 = vunpack.i.h.bf16 %v4314_v61  ;;  %v4315_v33 = vunpack.i.l.bf16 %v4314_v61  ;;  %s6352_s28 = scalar_lea.hbm %s6411_s5, %s3515_s30 }
 0x1dd   : > { %3741 = vmatpush3.bf16.xpose.msra.mxu0 %v822_v17 }
 0x1de   : > { %4127 = vmatprep.subr.msk.bf16.mxu0 %vm778_vm0, %v777_v53  ;;  %v5121_v46 = vpack.c.bf16 %v4316_v32, %v4315_v33 }
 0x1df   : > { %1270 = vrot.lane.b32.xlu1 %v5087_v19, %s4736_s11 }
 0x1e0   : > { %1111 = vrot.lane.b32.xlu0 %v5085_v18, %s4736_s11 }
 0x1e5   : > { %3743 = vmatpush3.bf16.xpose.msra.mxu0 %v825_v20 }
 0x1ec   : > { %3745 = vmatmul.mubr.msk.bf16.vlgmr.msra.gmra.mrb[16].mxu0 %vm778_vm0, %v4931_v25 }
 0x1ed   : > { %3748 = vmatprep.mubr.msk.bf16.mxu0 %vm778_vm0, %v4950_v40 }
 0x1f4   : > { %3749 = vmatmul.mubr.msk.bf16.gmra.mrb[20].mxu0 %vm778_vm0, %v4948_v38 }
 0x1f5   : > { %3752 = vmatprep.mubr.msk.bf16.mxu0 %vm778_vm0, %v4965_v52 }
 0x1fc   : > { %3753 = vmatmul.mubr.msk.bf16.gmra.mrb[24].mxu0 %vm778_vm0, %v4959_v49 }
 0x1fd   : > { %3756 = vmatprep.mubr.msk.bf16.mxu0 %vm778_vm0, %v4978_v63 }
 0x204   : > { %3757 = vmatmul.mubr.msk.bf16.gmra.mrb[28].mxu0 %vm778_vm0, %v4976_v62 }
 0x205   : > { %3776 = vmatprep.mubr.msk.bf16.mxu0 %vm778_vm0, %v5008_v11 }
 0x225   : > { %v935_v21 = vpop.permute.xlu1 %934 }
 0x226   : > { %v933_v23 = vpop.permute.xlu0 %932  ;;  %v976_v43 = vsel %vm778_vm0, %v935_v21, 0 }
 0x227   : > { %4128 = vmatprep.subr.msk.bf16.mxu0 %vm778_vm0, %v933_v23  ;;  %v973_v24 = vsel %vm778_vm0, %v933_v23, 0 }
 0x228   : > { %3761 = vmatpush3.bf16.xpose.msra.mxu0 %v973_v24 }
 0x229   : > { %v4304_v28 = vpop.permute.xlu1 %4303  ;;  %4129 = vmatprep.subr.msk.bf16.mxu0 %vm778_vm0, %v935_v21 }
 0x22a   : > { %v4306_v29 = vunpack.i.h.bf16 %v4304_v28  ;;  %v4305_v30 = vunpack.i.l.bf16 %v4304_v28  ;;  %v4319_v31 = vpop.permute.xlu0 %4318 }
 0x22b   : > { %v4321_v47 = vunpack.i.h.bf16 %v4319_v31  ;;  %v4320_v48 = vunpack.i.l.bf16 %v4319_v31 }
 0x22c   : > { %v5114_v34 = vpack.c.bf16 %v4306_v29, %v4305_v30 }
 0x22d   : > { %v5116_v35 = vpop.permute.xlu1 %4308  ;;  %v5131_v58 = vpack.c.bf16 %v4321_v47, %v4320_v48 }
 0x22e   : > { %1272 = vrot.lane.b32.xlu1 %v5114_v34, %s4736_s11  ;;  %v4329_v36 = vpop.permute.xlu0 %4328  ;;  %v4311_v31 = vunpack.i.h.bf16 %v5116_v35 }
 0x22f   : > { %v4331_v39 = vunpack.i.h.bf16 %v4329_v36  ;;  %v4330_v41 = vunpack.i.l.bf16 %v4329_v36 }
 0x230   : > { %3763 = vmatpush3.bf16.xpose.msra.mxu0 %v976_v43 }
 0x231   : > { %v939_v51 = vpop.permute.xlu1 %938  ;;  %v5123_v53 = vpack.c.bf16 %v4331_v39, %v4330_v41 }
 0x232   : > { %1274 = vrot.lane.b32.xlu1 %v5121_v46, %s4736_s11  ;;  %v982_v20 = vsel %vm778_vm0, %v939_v51, 0 }
 0x233   : > { %6459 = vst [vmem:[#allocation9_spill] sm:$0xff] %v5123_v53  ;;  %1278 = vrot.lane.b32.xlu0 %v5123_v53, %s4736_s11 }
 0x235   : > { %v4324_v56 = vpop.permute.xlu1 %4323 }
 0x236   : > { %v4326_v59 = vunpack.i.h.bf16 %v4324_v56  ;;  %v4325_v60 = vunpack.i.l.bf16 %v4324_v56 }
 0x237   : > { %1115 = vrot.lane.b32.xlu0 %v5131_v58, %s4736_s11 }
 0x238   : > { %v5135_v1 = vpack.c.bf16 %v4326_v59, %v4325_v60  ;;  %v5258_v60 = vand.u32 127, %v1431_v54 }
 0x239   : > { %v1102_v2 = vpop.permute.xlu1 %1101 }
 0x23a   : > { %6460 = vst [vmem:[#allocation10_spill] sm:$0xff] %v5135_v1  ;;  %1276 = vrot.lane.b32.xlu1 %v5135_v1, %s4736_s11  ;;  %4136 = vmatprep.subr.msk.bf16.mxu1 %vm778_vm0, %v1102_v2  ;;  %v1104_v5 = vpop.permute.xlu0 %1103  ;;  %v1142_v45 = vsel %vm778_vm0, %v1102_v2, 0  ;;  %vm1433_vm1 = vcmp.lt.s32.totalorder %v5258_v60, 8 }
 0x23b   : > { %3793 = vmatpush3.bf16.xpose.msra.mxu1 %v1142_v45  ;;  %944 = vrot.lane.b32.xlu0 %v5137_v3, %s4736_s11  ;;  %v1145_v16 = vsel %vm778_vm0, %v1104_v5, 0 }
 0x23c   : > { %4137 = vmatprep.subr.msk.bf16.mxu1 %vm778_vm0, %v1104_v5 }
 0x23d   : > { %v943_v50 = vpop.permute.xlu1 %942 }
 0x23e   : > { %v937_v7 = vpop.permute.xlu0 %936  ;;  %v988_v32 = vsel %vm778_vm0, %v943_v50, 0 }
 0x23f   : > { %2108 = vrot.lane.b32.xlu0 %v4931_v25, %s4740_s15  ;;  %4130 = vmatprep.subr.msk.bf16.mxu0 %vm778_vm0, %v937_v7  ;;  %v979_v8 = vsel %vm778_vm0, %v937_v7, 0 }
 0x240   : > { %3765 = vmatpush3.bf16.xpose.msra.mxu0 %v979_v8 }
 0x241   : > { %v4334_v0 = vpop.permute.xlu1 %4333  ;;  %4131 = vmatprep.subr.msk.bf16.mxu0 %vm778_vm0, %v939_v51 }
 0x242   : > { %v4336_v12 = vunpack.i.h.bf16 %v4334_v0  ;;  %v4335_v13 = vunpack.i.l.bf16 %v4334_v0  ;;  %v5151_v15 = vpop.permute.xlu0 %4338 }
 0x243   : > { %3795 = vmatpush3.bf16.xpose.msra.mxu1 %v1145_v16  ;;  %2110 = vrot.lane.b32.xlu0 %v4950_v40, %s4740_s15 }
 0x244   : > { %v5156_v17 = vpack.c.bf16 %v4336_v12, %v4335_v13 }
 0x245   : > { %v1106_v25 = vpop.permute.xlu1 %1105 }
 0x246   : > { %6461 = vst [vmem:[#allocation11_spill] sm:$0xff] %v5156_v17  ;;  %1280 = vrot.lane.b32.xlu1 %v5156_v17, %s4736_s11  ;;  %4138 = vmatprep.subr.msk.bf16.mxu1 %vm778_vm0, %v1106_v25  ;;  %v1108_v61 = vpop.permute.xlu0 %1107  ;;  %v1148_v21 = vsel %vm778_vm0, %v1106_v25, 0 }
 0x247   : > { %2114 = vrot.lane.b32.xlu0 %v4965_v52, %s4740_s15 }
 0x248   : > { %3767 = vmatpush3.bf16.xpose.msra.mxu0 %v982_v20 }
 0x249   : > { %v5165_v23 = vpop.permute.xlu1 %946 }
 0x24a   : > { %2106 = vrot.lane.b32.xlu1 %v4935_v27, %s4740_s15  ;;  %v941_v40 = vpop.permute.xlu0 %940  ;;  %v1151_v27 = vsel %vm778_vm0, %v1108_v61, 0  ;;  %v994_v56 = vsel %vm778_vm0, %v5165_v23, 0 }
 0x24b   : > { %2116 = vrot.lane.b32.xlu0 %v4959_v49, %s4740_s15  ;;  %3797 = vmatpush3.bf16.xpose.msra.mxu1 %v1148_v21  ;;  %v985_v52 = vsel %vm778_vm0, %v941_v40, 0 }
 0x24c   : > { %4139 = vmatprep.subr.msk.bf16.mxu1 %vm778_vm0, %v1108_v61  ;;  %4132 = vmatprep.subr.msk.bf16.mxu0 %vm778_vm0, %v941_v40 }
 0x24d   : > { %v4344_v24 = vpop.permute.xlu1 %4343 }
 0x24e   : > { %v4346_v28 = vunpack.i.h.bf16 %v4344_v24  ;;  %v4345_v29 = vunpack.i.l.bf16 %v4344_v24  ;;  %v1110_v49 = vpop.permute.xlu0 %1109 }
 0x24f   : > { %2120 = vrot.lane.b32.xlu0 %v4976_v62, %s4740_s15  ;;  %v4310_v62 = vunpack.i.l.bf16 %v5116_v35  ;;  %v1154_v33 = vsel %vm778_vm0, %v1110_v49, 0 }
 0x250   : > { %v5176_v30 = vpack.c.bf16 %v4346_v28, %v4345_v29  ;;  %3769 = vmatpush3.bf16.xpose.msra.mxu0 %v985_v52 }
 0x251   : > { %4133 = vmatprep.subr.msk.bf16.mxu0 %vm778_vm0, %v943_v50  ;;  %v5193_v36 = vpack.c.bf16 %v4311_v31, %v4310_v62  ;;  %v1271_v55 = vpop.permute.xlu1 %1270 }
 0x252   : > { %6462 = vst [vmem:[#allocation12_spill] sm:$0xff] %v5176_v30  ;;  %1284 = vrot.lane.b32.xlu1 %v5176_v30, %s4736_s11  ;;  %v1112_v39 = vpop.permute.xlu0 %1111  ;;  %v1311_v45 = vsel %vm778_vm0, %v1271_v55, 0 }
 0x253   : > { %2229 = vrot.lane.b32.xlu0 %v5006_v10, %s4740_s15  ;;  %3799 = vmatpush3.bf16.xpose.msra.mxu1 %v1151_v27 }
 0x254   : > { %4140 = vmatprep.subr.msk.bf16.mxu1 %vm778_vm0, %v1110_v49 }
 0x256   : > { %2112 = vrot.lane.b32.xlu1 %v4948_v38, %s4740_s15  ;;  %v1157_v38 = vsel %vm778_vm0, %v1112_v39, 0 }
 0x257   : > { %2233 = vrot.lane.b32.xlu0 %v5023_v22, %s4740_s15 }
 0x258   : > { %3771 = vmatpush3.bf16.xpose.msra.mxu0 %v988_v32 }
 0x25a   : > { %2118 = vrot.lane.b32.xlu1 %v4978_v63, %s4740_s15  ;;  %v4341_v63 = vunpack.i.h.bf16 %v5151_v15 }
 0x25b   : > { %1113 = vrot.lane.b32.xlu0 %v5193_v36, %s4736_s11  ;;  %3801 = vmatpush3.bf16.xpose.msra.mxu1 %v1154_v33 }
 0x25c   : > { %4141 = vmatprep.subr.msk.bf16.mxu1 %vm778_vm0, %v1112_v39 }
 0x25e   : > { %2227 = vrot.lane.b32.xlu1 %v5008_v11, %s4740_s15  ;;  %v4340_v11 = vunpack.i.l.bf16 %v5151_v15 }
 0x25f   : > { %2237 = vrot.lane.b32.xlu0 %v5042_v44, %s4740_s15 }
 0x262   : > { %2231 = vrot.lane.b32.xlu1 %v5048_v37, %s4740_s15 }
 0x263   : > { %2241 = vrot.lane.b32.xlu0 %v5067_v6, %s4740_s15  ;;  %3803 = vmatpush3.bf16.xpose.msra.mxu1 %v1157_v38 }
 0x266   : > { %2235 = vrot.lane.b32.xlu1 %v5071_v9, %s4740_s15 }
 0x267   : > { %2350 = vrot.lane.b32.xlu0 %v5037_v42, %s4740_s15 }
 0x26a   : > { %2348 = vrot.lane.b32.xlu1 %v5027_v26, %s4740_s15  ;;  %v5231_v26 = vpack.c.bf16 %v4341_v63, %v4340_v11 }
 0x26b   : > { %2354 = vrot.lane.b32.xlu0 %v5063_v4, %s4740_s15 }
 0x26c   : > { %6463 = vst [vmem:[#allocation13_spill] sm:$0xff] %v5231_v26 }
 0x26e   : > { %2352 = vrot.lane.b32.xlu1 %v5058_v57, %s4740_s15 }
 0x26f   : > { %2358 = vrot.lane.b32.xlu0 %v5085_v18, %s4740_s15 }
 0x272   : > { %2356 = vrot.lane.b32.xlu1 %v5078_v14, %s4740_s15 }
 0x273   : > { %2362 = vrot.lane.b32.xlu0 %v5131_v58, %s4740_s15 }
 0x276   : > { %2469 = vrot.lane.b32.xlu1 %v5087_v19, %s4740_s15 }
 0x277   : > { %2471 = vrot.lane.b32.xlu0 %v5114_v34, %s4740_s15 }
 0x27a   : > { %2473 = vrot.lane.b32.xlu1 %v5121_v46, %s4740_s15 }
 0x27b   : > { %1282 = vrot.lane.b32.xlu0 %v5231_v26, %s4736_s11 }
 0x27e   : > { %2239 = vrot.lane.b32.xlu1 %v5137_v3, %s4740_s15 }
 0x282   : > { %2360 = vrot.lane.b32.xlu1 %v5193_v36, %s4740_s15 }
 0x2a0   : > { %v1273_v2 = vpop.permute.xlu1 %1272 }
 0x2a1   : > { %v1314_v20 = vsel %vm778_vm0, %v1273_v2, 0 }
 0x2a4   : > { %v1275_v7 = vpop.permute.xlu1 %1274 }
 0x2a5   : > { %v5241_v35 = vpop.permute.xlu0 %1278  ;;  %v1317_v32 = vsel %vm778_vm0, %v1275_v7, 0 }
 0x2a9   : > { %v5243_v41 = vpop.permute.xlu0 %1115 }
 0x2ad   : > { %v945_v43 = vpop.permute.xlu0 %944 }
 0x2ae   : > { %4134 = vmatprep.subr.msk.bf16.mxu0 %vm778_vm0, %v945_v43  ;;  %v991_v47 = vsel %vm778_vm0, %v945_v43, 0 }
 0x2af   : > { %3773 = vmatpush3.bf16.xpose.msra.mxu0 %v991_v47 }
 0x2b0   : > { %4135 = vmatprep.subr.msk.bf16.mxu0 %vm778_vm0, %v5165_v23 }
 0x2b1   : > { %v5249_v48 = vpop.permute.xlu0 %2108 }
 0x2b5   : > { %v5251_v51 = vpop.permute.xlu0 %2110 }
 0x2b7   : > { %3775 = vmatpush3.bf16.xpose.msra.mxu0 %v994_v56 }
 0x2b8   : > { %4144 = vmatprep.subr.msk.bf16.mxu0 %vm778_vm0, %v1271_v55  ;;  %v1163_v55 = vsel %vm778_vm0, %v5243_v41, 0 }
 0x2b9   : > { %v5256_v59 = vpop.permute.xlu0 %2114 }
 0x2bd   : > { %v5260_v5 = vpop.permute.xlu0 %2116 }
 0x2be   : > { %3777 = vmatmul.mubr.msk.bf16.vlgmr.msra.gmra.mrb[32].mxu0 %vm778_vm0, %v5006_v10 }
 0x2bf   : > { %v3746_v50 = vpop.f32.mrb[16].mxu0  ;;  %3780 = vmatprep.mubr.msk.bf16.mxu0 %vm778_vm0, %v5048_v37  ;;  %3825 = vmatpush3.bf16.xpose.msra.mxu0 %v1311_v45  ;;  %v1277_v37 = vpop.permute.xlu1 %1276 }
 0x2c0   : > { %v861_v8 = vpop.f32.mrb[17].mxu0  ;;  %4145 = vmatprep.subr.msk.bf16.mxu0 %vm778_vm0, %v1273_v2  ;;  %v5271_v0 = vsel %vm1433_vm1, %v3746_v50, -1e+30  ;;  %v1320_v2 = vsel %vm778_vm0, %v1277_v37, 0 }
 0x2c1   : > { %v5273_v12 = vpop.permute.xlu0 %2120  ;;  %1502 = vmax.xlane.f32.xlu0 %v5271_v0  ;;  %v3747_v10 = vpop.f32.mrb[18].mxu0  ;;  %v5283_v16 = vsel %vm1433_vm1, %v861_v8, -1e+30 }
 0x2c2   : > { %v864_v13 = vpop.f32.mrb[19].mxu0  ;;  %v5298_v40 = vsel %vm1433_vm1, %v3747_v10, -1e+30 }
 0x2c3   : > { %v5278_v15 = vsel %vm1433_vm1, %v864_v13, -1e+30  ;;  %v5293_v21 = vpop.permute.xlu1 %1280 }
 0x2c4   : > { %1500 = vmax.xlane.f32.xlu1 %v5278_v15 }
 0x2c5   : > { %v5285_v25 = vpop.permute.xlu0 %2229  ;;  %1498 = vmax.xlane.f32.xlu0 %v5283_v16 }
 0x2c6   : > { %3781 = vmatmul.mubr.msk.bf16.gmra.mrb[36].mxu0 %vm778_vm0, %v5023_v22 }
 0x2c7   : > { %v3750_v61 = vpop.f32.mrb[20].mxu0  ;;  %3784 = vmatprep.mubr.msk.bf16.mxu0 %vm778_vm0, %v5071_v9  ;;  %3827 = vmatpush3.bf16.xpose.msra.mxu0 %v1314_v20  ;;  %v2107_v49 = vpop.permute.xlu1 %2106 }
 0x2c8   : > { %v877_v23 = vpop.f32.mrb[21].mxu0  ;;  %4146 = vmatprep.subr.msk.bf16.mxu0 %vm778_vm0, %v1275_v7  ;;  %v5302_v24 = vsel %vm1433_vm1, %v3750_v61, -1e+30  ;;  %v1323_v61 = vsel %vm778_vm0, %v5241_v35, 0 }
 0x2c9   : > { %v5304_v22 = vpop.permute.xlu0 %2233  ;;  %1504 = vmax.xlane.f32.xlu0 %v5298_v40  ;;  %1510 = vmax.xlane.f32.xlu1 %v5302_v24  ;;  %v3751_v9 = vpop.f32.mrb[22].mxu0  ;;  %v5310_v28 = vsel %vm1433_vm1, %v877_v23, -1e+30 }
 0x2ca   : > { %v880_v52 = vpop.f32.mrb[23].mxu0  ;;  %v5314_v29 = vsel %vm1433_vm1, %v3751_v9, -1e+30 }
 0x2cb   : > { %v5329_v39 = vsel %vm1433_vm1, %v880_v52, -1e+30  ;;  %v5339_v63 = vpop.permute.xlu1 %1284 }
 0x2cd   : > { %v1114_v27 = vpop.permute.xlu0 %1113  ;;  %1506 = vmax.xlane.f32.xlu1 %v5310_v28  ;;  %1512 = vmax.xlane.f32.xlu0 %v5314_v29 }
 0x2ce   : > { %3785 = vmatmul.mubr.msk.bf16.gmra.mrb[40].mxu0 %vm778_vm0, %v5042_v44  ;;  %4142 = vmatprep.subr.msk.bf16.mxu1 %vm778_vm0, %v1114_v27  ;;  %v1160_v31 = vsel %vm778_vm0, %v1114_v27, 0 }
 0x2cf   : > { %v3754_v62 = vpop.f32.mrb[24].mxu0  ;;  %3788 = vmatprep.mubr.msk.bf16.mxu0 %vm778_vm0, %v5137_v3  ;;  %3805 = vmatpush3.bf16.xpose.msra.mxu1 %v1160_v31  ;;  %v2113_v45 = vpop.permute.xlu1 %2112 }
 0x2d0   : > { %3829 = vmatpush3.bf16.xpose.msra.mxu0 %v1317_v32  ;;  %v893_v33 = vpop.f32.mrb[25].mxu0  ;;  %4143 = vmatprep.subr.msk.bf16.mxu1 %vm778_vm0, %v5243_v41  ;;  %v5333_v44 = vsel %vm1433_vm1, %v3754_v62, -1e+30 }
 0x2d1   : > { %4147 = vmatprep.subr.msk.bf16.mxu0 %vm778_vm0, %v1277_v37  ;;  %v5336_v38 = vpop.permute.xlu0 %2237  ;;  %1508 = vmax.xlane.f32.xlu0 %v5329_v39  ;;  %v3755_v3 = vpop.f32.mrb[26].mxu0  ;;  %v5350_v54 = vsel %vm1433_vm1, %v893_v33, -1e+30 }
 0x2d2   : > { %1518 = vmax.xlane.f32.xlu1 %v5333_v44  ;;  %v896_v11 = vpop.f32.mrb[27].mxu0  ;;  %v5344_v43 = vsel %vm1433_vm1, %v3755_v3, -1e+30 }
 0x2d3   : > { %v5363_v7 = vsel %vm1433_vm1, %v896_v11, -1e+30  ;;  %v2119_v20 = vpop.permute.xlu1 %2118 }
 0x2d5   : > { %v5346_v47 = vpop.permute.xlu0 %2241  ;;  %1520 = vmax.xlane.f32.xlu0 %v5344_v43 }
 0x2d6   : > { %1514 = vmax.xlane.f32.xlu1 %v5350_v54  ;;  %3789 = vmatmul.mubr.msk.bf16.gmra.mrb[44].mxu0 %vm778_vm0, %v5067_v6 }
 0x2d7   : > { %v3758_v56 = vpop.f32.mrb[28].mxu0  ;;  %3807 = vmatpush3.bf16.xpose.msra.mxu1 %v1163_v55  ;;  %3840 = vmatprep.mubr.msk.bf16.mxu0 %vm778_vm0, %v5087_v19 }
 0x2d8   : > { %3831 = vmatpush3.bf16.xpose.msra.mxu0 %v1320_v2  ;;  %v909_v50 = vpop.f32.mrb[29].mxu0  ;;  %3856 = vmatprep.subr.bf16.mxu1 %v2107_v49  ;;  %v5367_v6 = vsel %vm1433_vm1, %v3758_v56, -1e+30 }
 0x2d9   : > { %4148 = vmatprep.subr.msk.bf16.mxu0 %vm778_vm0, %v5241_v35  ;;  %v5371_v41 = vpop.permute.xlu0 %2350  ;;  %1516 = vmax.xlane.f32.xlu0 %v5363_v7  ;;  %v3759_v19 = vpop.f32.mrb[30].mxu0  ;;  %v5383_v37 = vsel %vm1433_vm1, %v909_v50, -1e+30  ;;  %v1326_v35 = vsel %vm778_vm0, %v5293_v21, 0 }
 0x2da   : > { %6464 = vst [vmem:[#allocation14_spill] sm:$0xff] %v5371_v41  ;;  %1526 = vmax.xlane.f32.xlu1 %v5367_v6  ;;  %v912_v8 = vpop.f32.mrb[31].mxu0  ;;  %v5377_v10 = vsel %vm1433_vm1, %v3759_v19, -1e+30 }
 0x2db   : > { %v5395_v23 = vsel %vm1433_vm1, %v912_v8, -1e+30 }
 0x2dd   : > { %v5379_v13 = vpop.permute.xlu0 %2354  ;;  %1528 = vmax.xlane.f32.xlu0 %v5377_v10 }
 0x2de   : > { %6465 = vst [vmem:[#allocation15_spill] sm:$0xff] %v5379_v13  ;;  %1522 = vmax.xlane.f32.xlu1 %v5383_v37  ;;  %3809 = vmatmul.mubr.msk.bf16.vlgmr.msra.gmra.mrb[0].mxu1 %vm778_vm0, %v5037_v42  ;;  %v2228_v42 = vpop.permute.xlu1 %2227 }
 0x2df   : > { %3812 = vmatprep.mubr.msk.bf16.mxu1 %vm778_vm0, %v5058_v57  ;;  %3857 = vmatpush3.bf16.msra.mxu1 %v2107_v49 }
 0x2e0   : > { %3833 = vmatpush3.bf16.xpose.msra.mxu0 %v1323_v61  ;;  %3858 = vmatprep.subr.bf16.mxu1 %v5249_v48 }
 0x2e1   : > { %4149 = vmatprep.subr.msk.bf16.mxu0 %vm778_vm0, %v5293_v21  ;;  %v5400_v9 = vpop.permute.xlu0 %2358  ;;  %1524 = vmax.xlane.f32.xlu0 %v5395_v23 }
 0x2e2   : > { %6466 = vst [vmem:[#allocation16_spill] sm:$0xff] %v5400_v9 }
 0x2e3   : > { %3859 = vmatpush3.bf16.msra.mxu1 %v5249_v48  ;;  %v2232_v48 = vpop.permute.xlu1 %2231 }
 0x2e4   : > { %3860 = vmatprep.subr.bf16.mxu1 %v5251_v51 }
 0x2e5   : > { %v5405_v57 = vpop.permute.xlu0 %2362 }
 0x2e6   : > { %6467 = vst [vmem:[#allocation17_spill] sm:$0xff] %v5405_v57  ;;  %3813 = vmatmul.mubr.msk.bf16.gmra.mrb[4].mxu1 %vm778_vm0, %v5063_v4 }
 0x2e7   : > { %3816 = vmatprep.mubr.msk.bf16.mxu1 %vm778_vm0, %v5078_v14  ;;  %3861 = vmatpush3.bf16.msra.mxu1 %v5251_v51  ;;  %v2236_v14 = vpop.permute.xlu1 %2235 }
 0x2e8   : > { %3835 = vmatpush3.bf16.xpose.msra.mxu0 %v1326_v35  ;;  %3862 = vmatprep.subr.bf16.mxu1 %v2113_v45 }
 0x2e9   : > { %v5414_v52 = vpop.permute.xlu0 %2471 }
 0x2ea   : > { %6468 = vst [vmem:[#allocation18_spill] sm:$0xff] %v5414_v52 }
 0x2eb   : > { %3863 = vmatpush3.bf16.msra.mxu1 %v2113_v45 }
 0x2ec   : > { %3864 = vmatprep.subr.bf16.mxu1 %v5256_v59 }
 0x2ed   : > { %v1283_v27 = vpop.permute.xlu0 %1282 }
 0x2ee   : > { %3817 = vmatmul.mubr.msk.bf16.gmra.mrb[8].mxu1 %vm778_vm0, %v5085_v18  ;;  %4150 = vmatprep.subr.msk.bf16.mxu0 %vm778_vm0, %v1283_v27  ;;  %v1329_v4 = vsel %vm778_vm0, %v1283_v27, 0  ;;  %v5428_v18 = vpop.permute.xlu1 %2348 }
 0x2ef   : > { %3820 = vmatprep.mubr.msk.bf16.mxu1 %vm778_vm0, %v5193_v36  ;;  %3865 = vmatpush3.bf16.msra.mxu1 %v5256_v59  ;;  %6469 = vst [vmem:[#allocation19_spill] sm:$0xff] %v5428_v18  ;;  %v1332_v36 = vsel %vm778_vm0, %v5339_v63, 0 }
 0x2f0   : > { %3837 = vmatpush3.bf16.xpose.msra.mxu0 %v1329_v4  ;;  %3866 = vmatprep.subr.bf16.mxu1 %v5260_v5 }
 0x2f1   : > { %4151 = vmatprep.subr.msk.bf16.mxu0 %vm778_vm0, %v5339_v63 }
 0x2f2   : > { %v5436_v51 = vpop.permute.xlu1 %2352 }
 0x2f3   : > { %3867 = vmatpush3.bf16.msra.mxu1 %v5260_v5  ;;  %6470 = vst [vmem:[#allocation20_spill] sm:$0xff] %v5436_v51 }
 0x2f4   : > { %3868 = vmatprep.subr.bf16.mxu1 %v2119_v20 }
 0x2f6   : > { %3821 = vmatmul.mubr.msk.bf16.gmra.mrb[12].mxu1 %vm778_vm0, %v5131_v58  ;;  %v5444_v58 = vpop.permute.xlu1 %2356 }
 0x2f7   : > { %3869 = vmatpush3.bf16.msra.mxu1 %v2119_v20  ;;  %6471 = vst [vmem:[#allocation21_spill] sm:$0xff] %v5444_v58 }
 0x2f8   : > { %3839 = vmatpush3.bf16.xpose.msra.mxu0 %v1332_v36  ;;  %3870 = vmatprep.subr.bf16.mxu1 %v5273_v12 }
 0x2f9   : > { %3888 = vmatprep.subr.bf16.mxu0 %v2228_v42 }
 0x2fa   : > { %v5449_v59 = vpop.permute.xlu1 %2469 }
 0x2fb   : > { %3871 = vmatpush3.bf16.msra.mxu1 %v5273_v12  ;;  %6472 = vst [vmem:[#allocation22_spill] sm:$0xff] %v5449_v59 }
 0x2fc   : > { %3920 = vmatprep.subr.bf16.mxu1 %v5428_v18 }
 0x2ff   : > { %3841 = vmatmul.mubr.msk.bf16.vlgmr.msra.gmra.mrb[48].mxu0 %vm778_vm0, %v5114_v34  ;;  %v5455_v34 = vpop.permute.xlu1 %2473 }
 0x300   : > { %3844 = vmatprep.mubr.msk.bf16.mxu0 %vm778_vm0, %v5121_v46  ;;  %3889 = vmatpush3.bf16.msra.mxu0 %v2228_v42  ;;  %6473 = vst [vmem:[#allocation23_spill] sm:$0xff] %v5455_v34 }
 0x301   : > { %3890 = vmatprep.subr.bf16.mxu0 %v5285_v25 }
 0x303   : > { %v2240_v46 = vpop.permute.xlu1 %2239 }
 0x304   : > { %3891 = vmatpush3.bf16.msra.mxu0 %v5285_v25 }
 0x305   : > { %3892 = vmatprep.subr.bf16.mxu0 %v2232_v48 }
 0x307   : > { %3845 = vmatmul.mubr.msk.bf16.gmra.mrb[52].mxu0 %vm778_vm0, %v5135_v1 }
 0x308   : > { %3848 = vmatprep.mubr.msk.bf16.mxu0 %vm778_vm0, %v5123_v53  ;;  %3893 = vmatpush3.bf16.msra.mxu0 %v2232_v48 }
 0x309   : > { %3894 = vmatprep.subr.bf16.mxu0 %v5304_v22 }
 0x30c   : > { %3895 = vmatpush3.bf16.msra.mxu0 %v5304_v22 }
 0x30d   : > { %3896 = vmatprep.subr.bf16.mxu0 %v2236_v14 }
 0x30f   : > { %3849 = vmatmul.mubr.msk.bf16.gmra.mrb[56].mxu0 %vm778_vm0, %v5156_v17 }
 0x310   : > { %3852 = vmatprep.mubr.msk.bf16.mxu0 %vm778_vm0, %v5231_v26  ;;  %3897 = vmatpush3.bf16.msra.mxu0 %v2236_v14 }
 0x311   : > { %3898 = vmatprep.subr.bf16.mxu0 %v5336_v38 }
 0x314   : > { %3899 = vmatpush3.bf16.msra.mxu0 %v5336_v38 }
 0x315   : > { %3900 = vmatprep.subr.bf16.mxu0 %v2240_v46 }
 0x317   : > { %3853 = vmatmul.mubr.msk.bf16.gmra.mrb[60].mxu0 %vm778_vm0, %v5176_v30 }
 0x318   : > { %3901 = vmatpush3.bf16.msra.mxu0 %v2240_v46 }
 0x319   : > { %3902 = vmatprep.subr.bf16.mxu0 %v5346_v47 }
 0x31c   : > { %3903 = vmatpush3.bf16.msra.mxu0 %v5346_v47 }
 0x31d   : > { %3952 = vmatprep.subr.bf16.mxu0 %v5449_v59 }
 0x34e   : > { %v1503_v30 = vpop.xlane.xlu0 %1502 }
 0x352   : > { %v5567_v1 = vpop.xlane.xlu0 %1498 }
 0x391   : > { %v3778_v5 = vpop.f32.mrb[32].mxu0 }
 0x392   : > { %v1030_v12 = vpop.f32.mrb[33].mxu0  ;;  %v5470_v25 = vsel %vm1433_vm1, %v3778_v5, -1e+30 }
 0x393   : > { %1534 = vmax.xlane.f32.xlu1 %v5470_v25  ;;  %v3779_v21 = vpop.f32.mrb[34].mxu0  ;;  %v5502_v42 = vsel %vm1433_vm1, %v1030_v12, -1e+30 }
 0x394   : > { %v5475_v22 = vsel %vm1433_vm1, %v3779_v21, -1e+30  ;;  %v1033_v49 = vpop.f32.mrb[35].mxu0 }
 0x395   : > { %1536 = vmax.xlane.f32.xlu0 %v5475_v22  ;;  %v5507_v35 = vsel %vm1433_vm1, %v1033_v49, -1e+30 }
 0x399   : > { %v3782_v31 = vpop.f32.mrb[36].mxu0 }
 0x39a   : > { %v1046_v62 = vpop.f32.mrb[37].mxu0  ;;  %v5522_v5 = vsel %vm1433_vm1, %v3782_v31, -1e+30 }
 0x39b   : > { %v3783_v32 = vpop.f32.mrb[38].mxu0 }
 0x39c   : > { %v1049_v33 = vpop.f32.mrb[39].mxu0  ;;  %v5527_v12 = vsel %vm1433_vm1, %v3783_v32, -1e+30  ;;  %v5544_v32 = vsel %vm1433_vm1, %v1046_v62, -1e+30 }
 0x3a1   : > { %v3786_v38 = vpop.f32.mrb[40].mxu0 }
 0x3a2   : > { %v5478_v3 = vpop.f32.mrb[41].mxu0  ;;  %v5572_v53 = vsel %vm1433_vm1, %v3786_v38, -1e+30  ;;  %v1628_v38 = vsub.f32 %v5271_v0, %v1503_v30 }
 0x3a3   : > { %v3787_v63 = vpop.f32.mrb[42].mxu0 }
 0x3a4   : > { %v5480_v11 = vpop.f32.mrb[43].mxu0  ;;  %v5577_v59 = vsel %vm1433_vm1, %v3787_v63, -1e+30  ;;  %v1694_v41 = vmul.f32 1.442695, %v1628_v38 }
 0x3a5   : > { %6475 = vst [vmem:[#allocation25_spill] sm:$0xff] %v5577_v59  ;;  %v5611_v0 = vsel %vm1433_vm1, %v5480_v11, -1e+30 }
 0x3a6   : > { %6477 = vst [vmem:[#allocation27_spill] sm:$0xff] %v5611_v0  ;;  %4363 = vpow2.f32 %v1694_v41 }
 0x3a9   : > { %v5482_v47 = vpop.f32.mrb[44].mxu0 }
 0x3aa   : > { %v5484_v55 = vpop.f32.mrb[45].mxu0 }
 0x3ab   : > { %v5486_v56 = vpop.f32.mrb[46].mxu0 }
 0x3ac   : > { %v5488_v2 = vpop.f32.mrb[47].mxu0 }
 0x3b1   : > { %v3810_v45 = vpop.f32.mrb[0].mxu1 }
 0x3b2   : > { %v5492_v50 = vsel %vm1433_vm1, %v3810_v45, -1e+30  ;;  %v1199_v19 = vpop.f32.mrb[1].mxu1 }
 0x3b3   : > { %v3811_v8 = vpop.f32.mrb[2].mxu1  ;;  %1566 = vmax.xlane.f32.xlu1 %v5492_v50  ;;  %v5512_v27 = vsel %vm1433_vm1, %v1199_v19, -1e+30 }
 0x3b4   : > { %v5497_v20 = vsel %vm1433_vm1, %v3811_v8, -1e+30  ;;  %v1202_v61 = vpop.f32.mrb[3].mxu1 }
 0x3b5   : > { %1568 = vmax.xlane.f32.xlu0 %v5497_v20  ;;  %v5517_v36 = vsel %vm1433_vm1, %v1202_v61, -1e+30  ;;  %v5539_v61 = vpop.permute.xlu1 %2360 }
 0x3b6   : > { %6474 = vst [vmem:[#allocation24_spill] sm:$0xff] %v5539_v61  ;;  %v5586_v61 = vpop.xlane.xlu0 %1504 }
 0x3b7   : > { %1530 = vmax.xlane.f32.xlu1 %v5502_v42 }
 0x3b9   : > { %v3814_v48 = vpop.f32.mrb[4].mxu1  ;;  %1532 = vmax.xlane.f32.xlu0 %v5507_v35  ;;  %v5551_v17 = vpop.xlane.xlu1 %1500 }
 0x3ba   : > { %v1215_v4 = vpop.f32.mrb[5].mxu1  ;;  %v5532_v49 = vsel %vm1433_vm1, %v3814_v48, -1e+30  ;;  %v5549_v48 = vsel %vm1433_vm1, %v1049_v33, -1e+30 }
 0x3bb   : > { %v3815_v14 = vpop.f32.mrb[6].mxu1  ;;  %1562 = vmax.xlane.f32.xlu1 %v5512_v27  ;;  %v5556_v26 = vsel %vm1433_vm1, %v1215_v4, -1e+30 }
 0x3bc   : > { %v1218_v46 = vpop.f32.mrb[7].mxu1  ;;  %v5537_v31 = vsel %vm1433_vm1, %v3815_v14, -1e+30 }
 0x3bd   : > { %1564 = vmax.xlane.f32.xlu0 %v5517_v36  ;;  %v5563_v62 = vsel %vm1433_vm1, %v1218_v46, -1e+30  ;;  %v1511_v4 = vpop.xlane.xlu1 %1510 }
 0x3be   : > { %v1632_v30 = vsub.f32 %v5302_v24, %v1511_v4 }
 0x3bf   : > { %1542 = vmax.xlane.f32.xlu1 %v5522_v5 }
 0x3c0   : > { %v1702_v24 = vmul.f32 1.442695, %v1632_v30  ;;  %v5650_v30 = vsel %vm1433_vm1, %v5484_v55, -1e+30  ;;  %v5667_v55 = vpop.eup %4363 }
 0x3c1   : > { %v3818_v21 = vpop.f32.mrb[8].mxu1  ;;  %1544 = vmax.xlane.f32.xlu0 %v5527_v12  ;;  %v1507_v13 = vpop.xlane.xlu1 %1506  ;;  %6481 = vst [vmem:[#allocation31_spill] sm:$0xff] %v5650_v30 }
 0x3c2   : > { %v1231_v45 = vpop.f32.mrb[9].mxu1  ;;  %v5582_v46 = vsel %vm1433_vm1, %v3818_v21, -1e+30  ;;  %v5604_v21 = vsel %vm1433_vm1, %v5478_v3, -1e+30  ;;  %v1630_v11 = vsub.f32 %v5310_v28, %v1507_v13  ;;  %4365 = vpow2.f32 %v1702_v24 }
 0x3c3   : > { %v3819_v19 = vpop.f32.mrb[10].mxu1  ;;  %1574 = vmax.xlane.f32.xlu1 %v5532_v49  ;;  %v5616_v18 = vsel %vm1433_vm1, %v1231_v45, -1e+30 }
 0x3c4   : > { %v1234_v8 = vpop.f32.mrb[11].mxu1  ;;  %v5594_v63 = vsel %vm1433_vm1, %v3819_v19, -1e+30  ;;  %v1513_v19 = vpop.xlane.xlu0 %1512  ;;  %6478 = vst [vmem:[#allocation28_spill] sm:$0xff] %v5616_v18  ;;  %v1698_v28 = vmul.f32 1.442695, %v1630_v11 }
 0x3c5   : > { %1576 = vmax.xlane.f32.xlu0 %v5537_v31  ;;  %6476 = vst [vmem:[#allocation26_spill] sm:$0xff] %v5594_v63  ;;  %v5620_v3 = vpop.xlane.xlu1 %1518  ;;  %v5628_v4 = vsel %vm1433_vm1, %v1234_v8, -1e+30  ;;  %v1633_v41 = vsub.f32 %v5314_v29, %v1513_v19 }
 0x3c6   : > { %6479 = vst [vmem:[#allocation29_spill] sm:$0xff] %v5628_v4  ;;  %4367 = vpow2.f32 %v1698_v28 }
 0x3c7   : > { %1538 = vmax.xlane.f32.xlu1 %v5544_v32  ;;  %v1704_v29 = vmul.f32 1.442695, %v1633_v41 }
 0x3c9   : > { %v3822_v14 = vpop.f32.mrb[12].mxu1  ;;  %1540 = vmax.xlane.f32.xlu0 %v5549_v48  ;;  %v1515_v8 = vpop.xlane.xlu1 %1514  ;;  %4369 = vpow2.f32 %v1704_v29 }
 0x3ca   : > { %v1247_v34 = vpop.f32.mrb[13].mxu1  ;;  %v5644_v13 = vsel %vm1433_vm1, %v3822_v14, -1e+30  ;;  %v1634_v19 = vsub.f32 %v5350_v54, %v1515_v8 }
 0x3cb   : > { %v5558_v52 = vpop.f32.mrb[14].mxu1  ;;  %1570 = vmax.xlane.f32.xlu1 %v5556_v26  ;;  %6480 = vst [vmem:[#allocation30_spill] sm:$0xff] %v5644_v13  ;;  %v5660_v14 = vsel %vm1433_vm1, %v1247_v34, -1e+30  ;;  %v5676_v34 = vsel %vm1433_vm1, %v5486_v56, -1e+30 }
 0x3cc   : > { %v5565_v33 = vpop.f32.mrb[15].mxu1  ;;  %6482 = vst [vmem:[#allocation32_spill] sm:$0xff] %v5660_v14  ;;  %v1706_v54 = vmul.f32 1.442695, %v1634_v19  ;;  %v5679_v41 = vpop.eup %4365  ;;  %v5691_v56 = vsel %vm1433_vm1, %v5558_v52, -1e+30 }
 0x3cd   : > { %1572 = vmax.xlane.f32.xlu0 %v5563_v62  ;;  %6483 = vst [vmem:[#allocation33_spill] sm:$0xff] %v5679_v41  ;;  %v5706_v52 = vsel %vm1433_vm1, %v5488_v2, -1e+30 }
 0x3ce   : > { %4371 = vpow2.f32 %v1706_v54 }
 0x3cf   : > { %1550 = vmax.xlane.f32.xlu1 %v5572_v53 }
 0x3d1   : > { %1552 = vmax.xlane.f32.xlu0 %v5577_v59 }
 0x3d2   : > { %v5584_v57 = vpop.f32.mrb[48].mxu0 }
 0x3d3   : > { %v5588_v9 = vpop.f32.mrb[49].mxu0  ;;  %1582 = vmax.xlane.f32.xlu1 %v5582_v46 }
 0x3d4   : > { %v5596_v58 = vpop.f32.mrb[50].mxu0 }
 0x3d5   : > { %v5598_v51 = vpop.f32.mrb[51].mxu0  ;;  %1584 = vmax.xlane.f32.xlu0 %v5594_v63 }
 0x3d7   : > { %1546 = vmax.xlane.f32.xlu1 %v5604_v21 }
 0x3d9   : > { %1548 = vmax.xlane.f32.xlu0 %v5611_v0  ;;  %v5638_v0 = vsel %vm1433_vm1, %v5482_v47, -1e+30 }
 0x3da   : > { %v5618_v63 = vpop.f32.mrb[52].mxu0 }
 0x3db   : > { %v5622_v59 = vpop.f32.mrb[53].mxu0  ;;  %1578 = vmax.xlane.f32.xlu1 %v5616_v18  ;;  %v1509_v18 = vpop.xlane.xlu0 %1508 }
 0x3dc   : > { %v5630_v38 = vpop.f32.mrb[54].mxu0 }
 0x3dd   : > { %v5632_v45 = vpop.f32.mrb[55].mxu0  ;;  %1580 = vmax.xlane.f32.xlu0 %v5628_v4 }
 0x3df   : > { %1558 = vmax.xlane.f32.xlu1 %v5638_v0  ;;  %v1521_v11 = vpop.xlane.xlu0 %1520 }
 0x3e0   : > { %v1637_v28 = vsub.f32 %v5344_v43, %v1521_v11 }
 0x3e1   : > { %1590 = vmax.xlane.f32.xlu0 %v5644_v13 }
 0x3e2   : > { %v5652_v47 = vpop.f32.mrb[56].mxu0  ;;  %v1712_v43 = vmul.f32 1.442695, %v1637_v28  ;;  %v1631_v28 = vsub.f32 %v5329_v39, %v1509_v18 }
 0x3e3   : > { %v5654_v4 = vpop.f32.mrb[57].mxu0  ;;  %1554 = vmax.xlane.f32.xlu1 %v5650_v30  ;;  %v1626_v30 = vsub.f32 %v5283_v16, %v5567_v1 }
 0x3e4   : > { %v5662_v24 = vpop.f32.mrb[58].mxu0 }
 0x3e5   : > { %v5664_v13 = vpop.f32.mrb[59].mxu0  ;;  %1586 = vmax.xlane.f32.xlu0 %v5660_v14  ;;  %v1690_v8 = vmul.f32 1.442695, %v1626_v30  ;;  %v1629_v14 = vsub.f32 %v5298_v40, %v5586_v61  ;;  %v5698_v40 = vpop.eup %4367  ;;  %v1627_v61 = vsub.f32 %v5278_v15, %v5551_v17  ;;  %v5716_v15 = vsel %vm1433_vm1, %v5565_v33, -1e+30 }
 0x3e6   : > { %v5709_v11 = vpop.eup %4369  ;;  %v1527_v17 = vpop.xlane.xlu1 %1526 }
 0x3e7   : > { %1822 = vadd.xlane.f32.xlu1 %v5667_v55  ;;  %4373 = vpow2.f32 %v1690_v8  ;;  %v1696_v30 = vmul.f32 1.442695, %v1629_v14  ;;  %v1692_v54 = vmul.f32 1.442695, %v1627_v61  ;;  %v5719_v2 = vpop.eup %4371  ;;  %v1700_v14 = vmul.f32 1.442695, %v1631_v28 }
 0x3e8   : > { %4375 = vpow2.f32 %v1712_v43  ;;  %6484 = vst [vmem:[#allocation34_spill] sm:$0xff] %v5719_v2  ;;  %v1636_v8 = vsub.f32 %v5333_v44, %v5620_v3  ;;  %v1640_v28 = vsub.f32 %v5367_v6, %v1527_v17  ;;  %v5750_v6 = vsel %vm1433_vm1, %v5588_v9, -1e+30 }
 0x3e9   : > { %1560 = vmax.xlane.f32.xlu0 %v5676_v34  ;;  %4377 = vpow2.f32 %v1696_v30  ;;  %v5768_v9 = vsel %vm1433_vm1, %v5598_v51, -1e+30 }
 0x3ea   : > { %v5683_v1 = vpop.f32.mrb[60].mxu0  ;;  %4379 = vpow2.f32 %v1692_v54  ;;  %v1523_v18 = vpop.xlane.xlu1 %1522  ;;  %v1710_v33 = vmul.f32 1.442695, %v1636_v8 }
 0x3eb   : > { %v5685_v16 = vpop.f32.mrb[61].mxu0  ;;  %1830 = vadd.xlane.f32.xlu1 %v5679_v41  ;;  %v1517_v41 = vpop.xlane.xlu0 %1516  ;;  %4381 = vpow2.f32 %v1700_v14  ;;  %v1638_v44 = vsub.f32 %v5383_v37, %v1523_v18  ;;  %v1718_v37 = vmul.f32 1.442695, %v1640_v28  ;;  %v5795_v28 = vsel %vm1433_vm1, %v5618_v63, -1e+30 }
 0x3ec   : > { %v5693_v29 = vpop.f32.mrb[62].mxu0  ;;  %v1635_v30 = vsub.f32 %v5363_v7, %v1517_v41  ;;  %4383 = vpow2.f32 %v1710_v33  ;;  %v5813_v63 = vsel %vm1433_vm1, %v5632_v45, -1e+30  ;;  %v5832_v45 = vsel %vm1433_vm1, %v5683_v1, -1e+30 }
 0x3ed   : > { %v5695_v19 = vpop.f32.mrb[63].mxu0  ;;  %1592 = vmax.xlane.f32.xlu0 %v5691_v56  ;;  %v1714_v41 = vmul.f32 1.442695, %v1638_v44  ;;  %6485 = vst [vmem:[#allocation35_spill] sm:$0xff] %v5832_v45 }
 0x3ee   : > { %v1708_v3 = vmul.f32 1.442695, %v1635_v30 }
 0x3ef   : > { %1826 = vadd.xlane.f32.xlu1 %v5698_v40  ;;  %v1529_v43 = vpop.xlane.xlu0 %1528 }
 0x3f0   : > { %v1641_v8 = vsub.f32 %v5377_v10, %v1529_v43  ;;  %4385 = vpow2.f32 %v1708_v3  ;;  %v5759_v43 = vsel %vm1433_vm1, %v5596_v58, -1e+30  ;;  %v5789_v3 = vsel %vm1433_vm1, %v5622_v59, -1e+30 }
 0x3f1   : > { %1556 = vmax.xlane.f32.xlu0 %v5706_v52  ;;  %v5724_v39 = vpop.eup %4373  ;;  %4387 = vpow2.f32 %v1714_v41  ;;  %v5807_v59 = vsel %vm1433_vm1, %v5652_v47, -1e+30  ;;  %v5826_v47 = vsel %vm1433_vm1, %v5662_v24, -1e+30  ;;  %v5850_v24 = vsel %vm1433_vm1, %v5693_v29, -1e+30 }
 0x3f2   : > { %v5727_v61 = vpop.eup %4375  ;;  %v1720_v17 = vmul.f32 1.442695, %v1641_v8  ;;  %4389 = vpow2.f32 %v1718_v37  ;;  %6487 = vst [vmem:[#allocation37_spill] sm:$0xff] %v5850_v24 }
 0x3f3   : > { %1832 = vadd.xlane.f32.xlu1 %v5709_v11  ;;  %v5731_v54 = vpop.eup %4377  ;;  %v1525_v14 = vpop.xlane.xlu0 %1524 }
 0x3f4   : > { %v5742_v7 = vpop.eup %4379  ;;  %v1639_v18 = vsub.f32 %v5395_v23, %v1525_v14  ;;  %4391 = vpow2.f32 %v1720_v17  ;;  %v5801_v14 = vsel %vm1433_vm1, %v5630_v38, -1e+30  ;;  %v5819_v38 = vsel %vm1433_vm1, %v5654_v4, -1e+30 }
 0x3f5   : > { %1588 = vmax.xlane.f32.xlu0 %v5716_v15  ;;  %v5844_v4 = vsel %vm1433_vm1, %v5685_v16, -1e+30 }
 0x3f6   : > { %v1716_v10 = vmul.f32 1.442695, %v1639_v18  ;;  %6486 = vst [vmem:[#allocation36_spill] sm:$0xff] %v5844_v4 }
 0x3f7   : > { %1834 = vadd.xlane.f32.xlu1 %v5719_v2  ;;  %v5739_v2 = vsel %vm1433_vm1, %v5584_v57, -1e+30  ;;  %v5753_v57 = vpop.eup %4381 }
 0x3f8   : > { %v5762_v23 = vpop.eup %4383  ;;  %4393 = vpow2.f32 %v1716_v10 }
 0x3f9   : > { %1818 = vadd.xlane.f32.xlu0 %v5724_v39 }
 0x3fa   : > { %v5771_v33 = vpop.eup %4385 }
 0x3fb   : > { %1840 = vadd.xlane.f32.xlu1 %v5727_v61  ;;  %v5774_v58 = vpop.eup %4387 }
 0x3fc   : > { %v5777_v30 = vpop.eup %4389 }
 0x3fd   : > { %1824 = vadd.xlane.f32.xlu0 %v5731_v54 }
 0x3fe   : > { %v5780_v44 = vpop.eup %4391 }
 0x3ff   : > { %1598 = vmax.xlane.f32.xlu1 %v5739_v2 }
 0x401   : > { %1820 = vadd.xlane.f32.xlu0 %v5742_v7 }
 0x402   : > { %v5783_v51 = vpop.eup %4393 }
 0x403   : > { %1594 = vmax.xlane.f32.xlu1 %v5750_v6 }
 0x405   : > { %1828 = vadd.xlane.f32.xlu0 %v5753_v57 }
 0x407   : > { %1600 = vmax.xlane.f32.xlu1 %v5759_v43 }
 0x409   : > { %1838 = vadd.xlane.f32.xlu0 %v5762_v23 }
 0x40b   : > { %1596 = vmax.xlane.f32.xlu1 %v5768_v9 }
 0x40d   : > { %1836 = vadd.xlane.f32.xlu0 %v5771_v33 }
 0x40f   : > { %1842 = vadd.xlane.f32.xlu1 %v5774_v58 }
 0x411   : > { %1846 = vadd.xlane.f32.xlu0 %v5777_v30 }
 0x413   : > { %1848 = vadd.xlane.f32.xlu1 %v5780_v44 }
 0x415   : > { %1844 = vadd.xlane.f32.xlu0 %v5783_v51 }
 0x417   : > { %1602 = vmax.xlane.f32.xlu1 %v5789_v3 }
 0x419   : > { %1606 = vmax.xlane.f32.xlu0 %v5795_v28 }
 0x41b   : > { %1608 = vmax.xlane.f32.xlu1 %v5801_v14 }
 0x41d   : > { %1614 = vmax.xlane.f32.xlu0 %v5807_v59 }
 0x41f   : > { %1604 = vmax.xlane.f32.xlu1 %v5813_v63 }
 0x420   : > { %v1535_v41 = vpop.xlane.xlu1 %1534 }
 0x421   : > { %v1644_v8 = vsub.f32 %v5470_v25, %v1535_v41  ;;  %1610 = vmax.xlane.f32.xlu0 %v5819_v38  ;;  %v5838_v25 = vsel %vm1433_vm1, %v5664_v13, -1e+30  ;;  %v5856_v13 = vsel %vm1433_vm1, %v5695_v19, -1e+30 }
 0x422   : > { %6488 = vst [vmem:[#allocation38_spill] sm:$0xff] %v5856_v13  ;;  %v1537_v16 = vpop.xlane.xlu0 %1536 }
 0x423   : > { %v1726_v37 = vmul.f32 1.442695, %v1644_v8  ;;  %1616 = vmax.xlane.f32.xlu1 %v5826_v47 }
 0x425   : > { %4395 = vpow2.f32 %v1726_v37  ;;  %1622 = vmax.xlane.f32.xlu0 %v5832_v45  ;;  %v1645_v45 = vsub.f32 %v5475_v22, %v1537_v16 }
 0x427   : > { %1612 = vmax.xlane.f32.xlu1 %v5838_v25 }
 0x429   : > { %1618 = vmax.xlane.f32.xlu0 %v5844_v4 }
 0x42b   : > { %1624 = vmax.xlane.f32.xlu1 %v5850_v24 }
 0x42f   : > { %v5858_v1 = vpop.eup %4395  ;;  %1620 = vmax.xlane.f32.xlu1 %v5856_v13 }
 0x430   : > { %6489 = vst [vmem:[#allocation39_spill] sm:$0xff] %v5858_v1  ;;  %1854 = vadd.xlane.f32.xlu0 %v5858_v1 }
 0x440   : > { %v1567_v18 = vpop.xlane.xlu1 %1566 }
 0x441   : > { %v1660_v17 = vsub.f32 %v5492_v50, %v1567_v18 }
 0x442   : > { %v1569_v10 = vpop.xlane.xlu0 %1568 }
 0x443   : > { %v1758_v29 = vmul.f32 1.442695, %v1660_v17  ;;  %v1728_v17 = vmul.f32 1.442695, %v1645_v45 }
 0x444   : > { %v1531_v41 = vpop.xlane.xlu1 %1530 }
 0x445   : > { %4397 = vpow2.f32 %v1758_v29  ;;  %v1642_v8 = vsub.f32 %v5502_v42, %v1531_v41  ;;  %v1661_v42 = vsub.f32 %v5497_v20, %v1569_v10 }
 0x446   : > { %v1533_v37 = vpop.xlane.xlu0 %1532 }
 0x447   : > { %v1722_v60 = vmul.f32 1.442695, %v1642_v8  ;;  %v1643_v19 = vsub.f32 %v5507_v35, %v1533_v37 }
 0x448   : > { %v1563_v24 = vpop.xlane.xlu1 %1562 }
 0x449   : > { %4399 = vpow2.f32 %v1722_v60  ;;  %v1724_v13 = vmul.f32 1.442695, %v1643_v19  ;;  %v1658_v4 = vsub.f32 %v5512_v27, %v1563_v24  ;;  %v1760_v27 = vmul.f32 1.442695, %v1661_v42 }
 0x44a   : > { %v1565_v1 = vpop.xlane.xlu0 %1564 }
 0x44b   : > { %4401 = vpow2.f32 %v1724_v13  ;;  %v1754_v50 = vmul.f32 1.442695, %v1658_v4  ;;  %v1659_v18 = vsub.f32 %v5517_v36, %v1565_v1 }
 0x44c   : > { %v1543_v29 = vpop.xlane.xlu1 %1542 }
 0x44d   : > { %4403 = vpow2.f32 %v1754_v50  ;;  %v1756_v41 = vmul.f32 1.442695, %v1659_v18  ;;  %v1648_v35 = vsub.f32 %v5522_v5, %v1543_v29 }
 0x44e   : > { %v1545_v8 = vpop.xlane.xlu0 %1544 }
 0x44f   : > { %v5870_v22 = vpop.eup %4397  ;;  %4405 = vpow2.f32 %v1756_v41  ;;  %v1734_v16 = vmul.f32 1.442695, %v1648_v35  ;;  %v1649_v19 = vsub.f32 %v5527_v12, %v1545_v8 }
 0x450   : > { %v1575_v37 = vpop.xlane.xlu1 %1574  ;;  %1886 = vadd.xlane.f32.xlu0 %v5870_v22  ;;  %4407 = vpow2.f32 %v1728_v17 }
 0x451   : > { %v1664_v36 = vsub.f32 %v5532_v49, %v1575_v37  ;;  %4409 = vpow2.f32 %v1734_v16  ;;  %v1736_v35 = vmul.f32 1.442695, %v1649_v19 }
 0x452   : > { %v1577_v45 = vpop.xlane.xlu0 %1576  ;;  %4411 = vpow2.f32 %v1760_v27 }
 0x453   : > { %v5874_v4 = vpop.eup %4399  ;;  %v1766_v20 = vmul.f32 1.442695, %v1664_v36  ;;  %v1665_v16 = vsub.f32 %v5537_v31, %v1577_v45 }
 0x454   : > { %v1539_v24 = vpop.xlane.xlu1 %1538  ;;  %1850 = vadd.xlane.f32.xlu1 %v5874_v4 }
 0x455   : > { %v5877_v5 = vpop.eup %4401  ;;  %v1646_v13 = vsub.f32 %v5544_v32, %v1539_v24  ;;  %4413 = vpow2.f32 %v1766_v20 }
 0x456   : > { %v1541_v1 = vpop.xlane.xlu0 %1540  ;;  %1852 = vadd.xlane.f32.xlu0 %v5877_v5 }
 0x457   : > { %v5881_v10 = vpop.eup %4403  ;;  %v1730_v49 = vmul.f32 1.442695, %v1646_v13  ;;  %v1647_v60 = vsub.f32 %v5549_v48, %v1541_v1  ;;  %v1768_v13 = vmul.f32 1.442695, %v1665_v16 }
 0x458   : > { %v1571_v50 = vpop.xlane.xlu1 %1570  ;;  %1882 = vadd.xlane.f32.xlu1 %v5881_v10 }
 0x459   : > { %v5886_v18 = vpop.eup %4405  ;;  %4415 = vpow2.f32 %v1730_v49  ;;  %v1732_v17 = vmul.f32 1.442695, %v1647_v60  ;;  %v1662_v32 = vsub.f32 %v5556_v26, %v1571_v50 }
 0x45a   : > { %v1573_v29 = vpop.xlane.xlu0 %1572  ;;  %1884 = vadd.xlane.f32.xlu0 %v5886_v18  ;;  %v5890_v42 = vpop.eup %4407 }
 0x45b   : > { %4417 = vpow2.f32 %v1732_v17  ;;  %v1762_v41 = vmul.f32 1.442695, %v1662_v32  ;;  %v1663_v48 = vsub.f32 %v5563_v62, %v1573_v29  ;;  %v5894_v8 = vpop.eup %4409  ;;  %v6490_v32 = vld [vmem:[#allocation27_spill] sm:$0xff] }
 0x45c   : > { %v1551_v12 = vpop.xlane.xlu1 %1550  ;;  %1856 = vadd.xlane.f32.xlu1 %v5890_v42  ;;  %v5899_v36 = vpop.eup %4411 }
 0x45d   : > { %4419 = vpow2.f32 %v1762_v41  ;;  %v1764_v37 = vmul.f32 1.442695, %v1663_v48  ;;  %v1652_v26 = vsub.f32 %v5572_v53, %v1551_v12  ;;  %v6491_v41 = vld [vmem:[#allocation25_spill] sm:$0xff] }
 0x45e   : > { %v1553_v27 = vpop.xlane.xlu0 %1552  ;;  %1862 = vadd.xlane.f32.xlu0 %v5894_v8 }
 0x45f   : > { %4421 = vpow2.f32 %v1764_v37  ;;  %v1742_v20 = vmul.f32 1.442695, %v1652_v26  ;;  %v5902_v24 = vpop.eup %4413  ;;  %v1653_v48 = vsub.f32 %v6491_v41, %v1553_v27  ;;  %v6492_v37 = vld [vmem:[#allocation28_spill] sm:$0xff] }
 0x460   : > { %v1583_v62 = vpop.xlane.xlu1 %1582  ;;  %1888 = vadd.xlane.f32.xlu1 %v5899_v36  ;;  %4423 = vpow2.f32 %v1736_v35 }
 0x461   : > { %v1668_v31 = vsub.f32 %v5582_v46, %v1583_v62  ;;  %4425 = vpow2.f32 %v1742_v20 }
 0x462   : > { %v1585_v45 = vpop.xlane.xlu0 %1584  ;;  %1894 = vadd.xlane.f32.xlu0 %v5902_v24  ;;  %4427 = vpow2.f32 %v1768_v13  ;;  %v6493_v13 = vld [vmem:[#allocation29_spill] sm:$0xff] }
 0x463   : > { %v5906_v53 = vpop.eup %4415  ;;  %v1774_v1 = vmul.f32 1.442695, %v1668_v31 }
 0x464   : > { %v1547_v49 = vpop.xlane.xlu1 %1546  ;;  %1858 = vadd.xlane.f32.xlu1 %v5906_v53 }
 0x465   : > { %v5909_v60 = vpop.eup %4417  ;;  %v1650_v19 = vsub.f32 %v5604_v21, %v1547_v49  ;;  %4429 = vpow2.f32 %v1774_v1  ;;  %v1744_v1 = vmul.f32 1.442695, %v1653_v48 }
 0x466   : > { %v1549_v50 = vpop.xlane.xlu0 %1548  ;;  %1860 = vadd.xlane.f32.xlu0 %v5909_v60 }
 0x467   : > { %v5913_v17 = vpop.eup %4419  ;;  %v1738_v46 = vmul.f32 1.442695, %v1650_v19  ;;  %v1651_v29 = vsub.f32 %v6490_v32, %v1549_v50  ;;  %v6495_v19 = vld [vmem:[#allocation26_spill] sm:$0xff] }
 0x468   : > { %v1579_v35 = vpop.xlane.xlu1 %1578  ;;  %1890 = vadd.xlane.f32.xlu1 %v5913_v17  ;;  %v1669_v50 = vsub.f32 %v6495_v19, %v1585_v45 }
 0x469   : > { %v5918_v12 = vpop.eup %4421  ;;  %4431 = vpow2.f32 %v1738_v46  ;;  %v1740_v16 = vmul.f32 1.442695, %v1651_v29  ;;  %v1666_v21 = vsub.f32 %v6492_v37, %v1579_v35 }
 0x46a   : > { %v1581_v26 = vpop.xlane.xlu0 %1580  ;;  %1892 = vadd.xlane.f32.xlu0 %v5918_v12  ;;  %v5922_v20 = vpop.eup %4423  ;;  %v1776_v45 = vmul.f32 1.442695, %v1669_v50 }
 0x46b   : > { %4433 = vpow2.f32 %v1740_v16  ;;  %v1770_v62 = vmul.f32 1.442695, %v1666_v21  ;;  %v1667_v31 = vsub.f32 %v6493_v13, %v1581_v26  ;;  %v5926_v49 = vpop.eup %4425  ;;  %v6496_v16 = vld [vmem:[#allocation30_spill] sm:$0xff]  ;;  %v6498_v26 = vld [vmem:[#allocation31_spill] sm:$0xff] }
 0x46c   : > { %v1559_v27 = vpop.xlane.xlu1 %1558  ;;  %1864 = vadd.xlane.f32.xlu1 %v5922_v20  ;;  %6494 = vst [vmem:[#allocation27_spill] sm:$0xff] %v5926_v49  ;;  %v5931_v41 = vpop.eup %4427 }
 0x46d   : > { %4435 = vpow2.f32 %v1770_v62  ;;  %v1772_v46 = vmul.f32 1.442695, %v1667_v31  ;;  %v1656_v32 = vsub.f32 %v5638_v0, %v1559_v27 }
 0x46e   : > { %v1591_v29 = vpop.xlane.xlu0 %1590  ;;  %1870 = vadd.xlane.f32.xlu0 %v5926_v49 }
 0x46f   : > { %4437 = vpow2.f32 %v1772_v46  ;;  %v1750_v35 = vmul.f32 1.442695, %v1656_v32  ;;  %v1672_v48 = vsub.f32 %v6496_v16, %v1591_v29  ;;  %v5935_v21 = vpop.eup %4429  ;;  %v6499_v32 = vld [vmem:[#allocation32_spill] sm:$0xff] }
 0x470   : > { %v1555_v37 = vpop.xlane.xlu1 %1554  ;;  %1896 = vadd.xlane.f32.xlu1 %v5931_v41  ;;  %6497 = vst [vmem:[#allocation25_spill] sm:$0xff] %v5935_v21  ;;  %4439 = vpow2.f32 %v1744_v1 }
 0x471   : > { %v1654_v62 = vsub.f32 %v6498_v26, %v1555_v37  ;;  %4441 = vpow2.f32 %v1750_v35  ;;  %v1782_v31 = vmul.f32 1.442695, %v1672_v48 }
 0x472   : > { %v1587_v13 = vpop.xlane.xlu0 %1586  ;;  %1902 = vadd.xlane.f32.xlu0 %v5935_v21  ;;  %4443 = vpow2.f32 %v1776_v45 }
 0x473   : > { %v5939_v0 = vpop.eup %4431  ;;  %v1746_v46 = vmul.f32 1.442695, %v1654_v62  ;;  %v1670_v29 = vsub.f32 %v6499_v32, %v1587_v13  ;;  %4445 = vpow2.f32 %v1782_v31 }
 0x474   : > { %v1823_v27 = vpop.xlane.xlu1 %1822  ;;  %1866 = vadd.xlane.f32.xlu1 %v5939_v0 }
 0x475   : > { %v5942_v19 = vpop.eup %4433  ;;  %4447 = vpow2.f32 %v1746_v46  ;;  %v1778_v48 = vmul.f32 1.442695, %v1670_v29 }
 0x476   : > { %v1561_v1 = vpop.xlane.xlu0 %1560  ;;  %1868 = vadd.xlane.f32.xlu0 %v5942_v19 }
 0x477   : > { %v5946_v50 = vpop.eup %4435  ;;  %v1657_v37 = vsub.f32 %v5676_v34, %v1561_v1  ;;  %4449 = vpow2.f32 %v1778_v48 }
 0x478   : > { %v5948_v16 = vpop.xlane.xlu1 %1830  ;;  %1898 = vadd.xlane.f32.xlu1 %v5946_v50 }
 0x479   : > { %v5951_v35 = vpop.eup %4437  ;;  %v1752_v31 = vmul.f32 1.442695, %v1657_v37 }
 0x47a   : > { %6500 = vst [vmem:[#allocation28_spill] sm:$0xff] %v5951_v35  ;;  %v1593_v45 = vpop.xlane.xlu0 %1592  ;;  %1900 = vadd.xlane.f32.xlu0 %v5951_v35  ;;  %v5955_v26 = vpop.eup %4439 }
 0x47b   : > { %6501 = vst [vmem:[#allocation29_spill] sm:$0xff] %v5955_v26  ;;  %v5958_v13 = vpop.eup %4441  ;;  %v1673_v32 = vsub.f32 %v5691_v56, %v1593_v45  ;;  %4451 = vpow2.f32 %v1752_v31 }
 0x47c   : > { %v1827_v62 = vpop.xlane.xlu1 %1826  ;;  %1872 = vadd.xlane.f32.xlu1 %v5955_v26  ;;  %6502 = vst [vmem:[#allocation26_spill] sm:$0xff] %v5958_v13  ;;  %v5962_v46 = vpop.eup %4443 }
 0x47d   : > { %v5966_v1 = vpop.eup %4445  ;;  %v1784_v26 = vmul.f32 1.442695, %v1673_v32 }
 0x47e   : > { %v1557_v21 = vpop.xlane.xlu0 %1556  ;;  %1878 = vadd.xlane.f32.xlu0 %v5958_v13  ;;  %6503 = vst [vmem:[#allocation30_spill] sm:$0xff] %v5966_v1 }
 0x47f   : > { %v1655_v34 = vsub.f32 %v5706_v52, %v1557_v21  ;;  %v5969_v48 = vpop.eup %4447 }
 0x480   : > { %v1833_v29 = vpop.xlane.xlu1 %1832  ;;  %1904 = vadd.xlane.f32.xlu1 %v5962_v46 }
 0x481   : > { %v1748_v49 = vmul.f32 1.442695, %v1655_v34  ;;  %v5973_v45 = vpop.eup %4449 }
 0x482   : > { %v1589_v35 = vpop.xlane.xlu0 %1588  ;;  %1910 = vadd.xlane.f32.xlu0 %v5966_v1  ;;  %6504 = vst [vmem:[#allocation31_spill] sm:$0xff] %v5973_v45 }
 0x483   : > { %4453 = vpow2.f32 %v1748_v49  ;;  %v1671_v56 = vsub.f32 %v5716_v15, %v1589_v35 }
 0x484   : > { %v1835_v37 = vpop.xlane.xlu1 %1834  ;;  %1874 = vadd.xlane.f32.xlu1 %v5969_v48  ;;  %4455 = vpow2.f32 %v1784_v26 }
 0x485   : > { %v1780_v52 = vmul.f32 1.442695, %v1671_v56  ;;  %v5976_v34 = vpop.eup %4451 }
 0x486   : > { %v1819_v21 = vpop.xlane.xlu0 %1818 }
 0x487   : > { %4457 = vpow2.f32 %v1780_v52 }
 0x488   : > { %v1841_v31 = vpop.xlane.xlu1 %1840  ;;  %1906 = vadd.xlane.f32.xlu1 %v5973_v45 }
 0x48a   : > { %v1825_v32 = vpop.xlane.xlu0 %1824 }
 0x48b   : > { %4459 = vrcp.f32 %v1825_v32 }
 0x48c   : > { %v1599_v1 = vpop.xlane.xlu1 %1598  ;;  %1880 = vadd.xlane.f32.xlu1 %v5976_v34  ;;  %4461 = vrcp.f32 %v1819_v21 }
 0x48d   : > { %v5979_v15 = vpop.eup %4453  ;;  %v1676_v49 = vsub.f32 %v5739_v2, %v1599_v1  ;;  %4463 = vrcp.f32 %v1823_v27 }
 0x48e   : > { %v1821_v35 = vpop.xlane.xlu0 %1820  ;;  %1876 = vadd.xlane.f32.xlu0 %v5979_v15  ;;  %v5983_v26 = vpop.eup %4455 }
 0x48f   : > { %6505 = vst [vmem:[#allocation32_spill] sm:$0xff] %v5983_v26  ;;  %v1790_v56 = vmul.f32 1.442695, %v1676_v49  ;;  %4465 = vrcp.f32 %v1821_v35 }
 0x490   : > { %4467 = vrcp.f32 %v1827_v62  ;;  %v1595_v52 = vpop.xlane.xlu1 %1594  ;;  %1912 = vadd.xlane.f32.xlu1 %v5983_v26 }
 0x491   : > { %v5986_v32 = vpop.eup %4457  ;;  %4469 = vpow2.f32 %v1790_v56  ;;  %v1674_v45 = vsub.f32 %v5750_v6, %v1595_v52 }
 0x492   : > { %v1829_v21 = vpop.xlane.xlu0 %1828  ;;  %1908 = vadd.xlane.f32.xlu0 %v5986_v32 }
 0x493   : > { %v1786_v2 = vmul.f32 1.442695, %v1674_v45  ;;  %4471 = vrcp.f32 %v1829_v21 }
 0x494   : > { %4473 = vrcp.f32 %v1833_v29  ;;  %v1601_v27 = vpop.xlane.xlu1 %1600 }
 0x495   : > { %4475 = vpow2.f32 %v1786_v2  ;;  %v1677_v1 = vsub.f32 %v5759_v43, %v1601_v27  ;;  %v4460_v49 = vpop.eup %4459 }
 0x496   : > { %4477 = vrcp.f32 %v5948_v16  ;;  %v1839_v62 = vpop.xlane.xlu0 %1838  ;;  %v4462_v35 = vpop.eup %4461  ;;  %v2013_v52 = vmul.f32 %v4460_v49, %v5731_v54 }
 0x497   : > { %v1792_v26 = vmul.f32 1.442695, %v1677_v1  ;;  %v4464_v13 = vpop.eup %4463  ;;  %4479 = vrcp.f32 %v1835_v37  ;;  %v2010_v2 = vmul.f32 %v4462_v35, %v5724_v39 }
 0x498   : > { %v1597_v56 = vpop.xlane.xlu1 %1596  ;;  %v2012_v16 = vmul.f32 %v4464_v13, %v5667_v55  ;;  %v6506_v13 = vld [vmem:[#allocation19_spill] sm:$0xff] }
 0x499   : > { %v4466_v6 = vpop.eup %4465  ;;  %4481 = vpow2.f32 %v1792_v26  ;;  %v1675_v45 = vsub.f32 %v5768_v9, %v1597_v56 }
 0x49a   : > { %v4468_v29 = vpop.eup %4467  ;;  %v1837_v21 = vpop.xlane.xlu0 %1836  ;;  %v2011_v43 = vmul.f32 %v4466_v6, %v5742_v7  ;;  %v2075_v9 = vpack.c.bf16 %v2013_v52, %v2012_v16  ;;  %v6507_v52 = vld [vmem:[#allocation14_spill] sm:$0xff]  ;;  %v6509_v16 = vld [vmem:[#allocation20_spill] sm:$0xff] }
 0x49b   : > { %v5996_v27 = vpop.eup %4469  ;;  %v1788_v1 = vmul.f32 1.442695, %v1675_v45  ;;  %4483 = vrcp.f32 %v1837_v21  ;;  %v2014_v7 = vmul.f32 %v4468_v29, %v5698_v40 }
 0x49c   : > { %4485 = vrcp.f32 %v1839_v62  ;;  %v1843_v37 = vpop.xlane.xlu1 %1842  ;;  %1918 = vadd.xlane.f32.xlu0 %v5996_v27  ;;  %v2074_v54 = vpack.c.bf16 %v2011_v43, %v2010_v2 }
 0x49d   : > { %v4472_v26 = vpop.eup %4471  ;;  %4487 = vpow2.f32 %v1788_v1 }
 0x49e   : > { %v4474_v49 = vpop.eup %4473  ;;  %4489 = vrcp.f32 %v1841_v31  ;;  %3872 = vmatprep.mubr.bf16.mxu1 %v2074_v54  ;;  %v1847_v39 = vpop.xlane.xlu0 %1846  ;;  %v2015_v35 = vmul.f32 %v4472_v26, %v5753_v57  ;;  %v6508_v57 = vld [vmem:[#allocation33_spill] sm:$0xff]  ;;  %v6510_v54 = vld [vmem:[#allocation34_spill] sm:$0xff] }
 0x49f   : > { %v6002_v56 = vpop.eup %4475  ;;  %3873 = vmatmul.mubr.bf16.vlgmr.msra.gmra.mrb[16].mxu1 %v2075_v9  ;;  %4491 = vrcp.f32 %v1843_v37  ;;  %v2017_v31 = vmul.f32 %v4474_v49, %v5709_v11 }
 0x4a0   : > { %v4478_v55 = vpop.eup %4477  ;;  %3921 = vmatpush3.bf16.msra.mxu1 %v6506_v13  ;;  %v1849_v62 = vpop.xlane.xlu1 %1848  ;;  %1914 = vadd.xlane.f32.xlu1 %v6002_v56  ;;  %v2076_v6 = vpack.c.bf16 %v2015_v35, %v2014_v7 }
 0x4a1   : > { %3922 = vmatprep.subr.bf16.mxu1 %v6507_v52  ;;  %v4480_v45 = vpop.eup %4479  ;;  %v2016_v21 = vmul.f32 %v4478_v55, %v6508_v57 }
 0x4a2   : > { %3876 = vmatprep.mubr.bf16.mxu1 %v2076_v6  ;;  %v1845_v40 = vpop.xlane.xlu0 %1844  ;;  %v2018_v26 = vmul.f32 %v4480_v45, %v6510_v54 }
 0x4a3   : > { %v6008_v29 = vpop.eup %4481  ;;  %4493 = vrcp.f32 %v1845_v40  ;;  %v2077_v11 = vpack.c.bf16 %v2017_v31, %v2016_v21  ;;  %v6512_v21 = vld [vmem:[#allocation21_spill] sm:$0xff] }
 0x4a4   : > { %4495 = vrcp.f32 %v1849_v62  ;;  %3923 = vmatpush3.bf16.msra.mxu1 %v6507_v52  ;;  %v1603_v2 = vpop.xlane.xlu1 %1602  ;;  %1920 = vadd.xlane.f32.xlu1 %v6008_v29 }
 0x4a5   : > { %v4484_v43 = vpop.eup %4483  ;;  %3924 = vmatprep.subr.bf16.mxu1 %v6509_v16  ;;  %v1678_v1 = vsub.f32 %v5789_v3, %v1603_v2  ;;  %4497 = vrcp.f32 %v1847_v39  ;;  %v6511_v3 = vld [vmem:[#allocation15_spill] sm:$0xff] }
 0x4a6   : > { %v4486_v37 = vpop.eup %4485  ;;  %v2019_v9 = vmul.f32 %v4484_v43, %v5771_v33  ;;  %v1607_v6 = vpop.xlane.xlu0 %1606 }
 0x4a7   : > { %v6017_v49 = vpop.eup %4487  ;;  %v1794_v7 = vmul.f32 1.442695, %v1678_v1  ;;  %3877 = vmatmul.mubr.bf16.gmra.mrb[20].mxu1 %v2077_v11  ;;  %v2020_v62 = vmul.f32 %v4486_v37, %v5762_v23  ;;  %v1680_v57 = vsub.f32 %v5795_v28, %v1607_v6  ;;  %v6513_v28 = vld [vmem:[#allocation16_spill] sm:$0xff] }
 0x4a8   : > { %v4490_v35 = vpop.eup %4489  ;;  %3925 = vmatpush3.bf16.msra.mxu1 %v6509_v16  ;;  %v1609_v55 = vpop.xlane.xlu1 %1608  ;;  %1916 = vadd.xlane.f32.xlu0 %v6017_v49  ;;  %v2078_v13 = vpack.c.bf16 %v2019_v9, %v2018_v26 }
 0x4a9   : > { %4499 = vpow2.f32 %v1794_v7  ;;  %3926 = vmatprep.subr.bf16.mxu1 %v6511_v3  ;;  %v1681_v39 = vsub.f32 %v5801_v14, %v1609_v55  ;;  %v4492_v33 = vpop.eup %4491  ;;  %v2021_v31 = vmul.f32 %v4490_v35, %v5727_v61  ;;  %v1798_v37 = vmul.f32 1.442695, %v1680_v57 }
 0x4aa   : > { %3880 = vmatprep.mubr.bf16.mxu1 %v2078_v13  ;;  %v2022_v23 = vmul.f32 %v4492_v33, %v5774_v58  ;;  %v6514_v58 = vld [vmem:[#allocation24_spill] sm:$0xff]  ;;  %v1615_v55 = vpop.xlane.xlu0 %1614  ;;  %v6517_v13 = vld [vmem:[#allocation9_spill] sm:$0xff]  ;;  %v6518_v33 = vld [vmem:[#allocation10_spill] sm:$0xff] }
 0x4ab   : > { %v1800_v52 = vmul.f32 1.442695, %v1681_v39  ;;  %v2079_v14 = vpack.c.bf16 %v2021_v31, %v2020_v62 }
 0x4ac   : > { %3927 = vmatpush3.bf16.msra.mxu1 %v6511_v3  ;;  %v1605_v45 = vpop.xlane.xlu1 %1604 }
 0x4ad   : > { %v4494_v40 = vpop.eup %4493  ;;  %4501 = vpow2.f32 %v1800_v52  ;;  %3928 = vmatprep.subr.bf16.mxu1 %v6512_v21  ;;  %v1679_v2 = vsub.f32 %v5813_v63, %v1605_v45 }
 0x4ae   : > { %v4496_v43 = vpop.eup %4495  ;;  %v2023_v16 = vmul.f32 %v4494_v40, %v5783_v51  ;;  %v1611_v3 = vpop.xlane.xlu0 %1610 }
 0x4af   : > { %v1796_v1 = vmul.f32 1.442695, %v1679_v2  ;;  %3881 = vmatmul.mubr.bf16.gmra.mrb[24].mxu1 %v2079_v14  ;;  %v4498_v61 = vpop.eup %4497  ;;  %v2025_v54 = vmul.f32 %v4496_v43, %v5780_v44  ;;  %v6515_v44 = vld [vmem:[#allocation17_spill] sm:$0xff]  ;;  %v1682_v45 = vsub.f32 %v5819_v38, %v1611_v3 }
 0x4b0   : > { %3929 = vmatpush3.bf16.msra.mxu1 %v6512_v21  ;;  %v2080_v11 = vpack.c.bf16 %v2023_v16, %v2022_v23  ;;  %v2024_v26 = vmul.f32 %v4498_v61, %v5777_v30  ;;  %v6516_v30 = vld [vmem:[#allocation22_spill] sm:$0xff]  ;;  %v1617_v39 = vpop.xlane.xlu1 %1616  ;;  %v1684_v61 = vsub.f32 %v5807_v59, %v1615_v55 }
 0x4b1   : > { %4503 = vpow2.f32 %v1796_v1  ;;  %3930 = vmatprep.subr.bf16.mxu1 %v6513_v28  ;;  %v1802_v57 = vmul.f32 1.442695, %v1682_v45  ;;  %v1685_v21 = vsub.f32 %v5826_v47, %v1617_v39 }
 0x4b2   : > { %3884 = vmatprep.mubr.bf16.mxu1 %v2080_v11  ;;  %4505 = vpow2.f32 %v1798_v37  ;;  %v2081_v51 = vpack.c.bf16 %v2025_v54, %v2024_v26  ;;  %v6055_v62 = vpop.xlane.xlu0 %1622  ;;  %v1806_v47 = vmul.f32 1.442695, %v1684_v61 }
 0x4b3   : > { %v6034_v63 = vpop.eup %4499  ;;  %4507 = vpow2.f32 %v1802_v57  ;;  %v1808_v43 = vmul.f32 1.442695, %v1685_v21 }
 0x4b4   : > { %3931 = vmatpush3.bf16.msra.mxu1 %v6513_v28  ;;  %1922 = vadd.xlane.f32.xlu1 %v6034_v63  ;;  %v1613_v6 = vpop.xlane.xlu1 %1612 }
 0x4b5   : > { %3932 = vmatprep.subr.bf16.mxu1 %v6514_v58  ;;  %v1683_v23 = vsub.f32 %v5838_v25, %v1613_v6 }
 0x4b6   : > { %v6059_v52 = vpop.xlane.xlu0 %1618 }
 0x4b7   : > { %v6040_v9 = vpop.eup %4501  ;;  %3885 = vmatmul.mubr.bf16.gmra.mrb[28].mxu1 %v2081_v51  ;;  %v1804_v11 = vmul.f32 1.442695, %v1683_v23 }
 0x4b8   : > { %3933 = vmatpush3.bf16.msra.mxu1 %v6514_v58  ;;  %1928 = vadd.xlane.f32.xlu1 %v6040_v9  ;;  %v6061_v31 = vpop.xlane.xlu1 %1624 }
 0x4b9   : > { %3934 = vmatprep.subr.bf16.mxu1 %v6515_v44 }
 0x4bb   : > { %v6045_v7 = vpop.eup %4503 }
 0x4bc   : > { %3935 = vmatpush3.bf16.msra.mxu1 %v6515_v44  ;;  %1924 = vadd.xlane.f32.xlu0 %v6045_v7  ;;  %v6050_v35 = vpop.eup %4505  ;;  %v6065_v2 = vpop.xlane.xlu1 %1620 }
 0x4bd   : > { %4056 = vmatprep.subr.bf16.mxu1 %v6516_v30  ;;  %v1855_v40 = vpop.xlane.xlu0 %1854  ;;  %v6069_v54 = vpop.eup %4507 }
 0x4c0   : > { %1926 = vadd.xlane.f32.xlu0 %v6050_v35 }
 0x4c9   : > { %2477 = vrot.lane.b32.xlu1 %v6517_v13, %s4740_s15 }
 0x4d6   : > { %2475 = vrot.lane.b32.xlu0 %v6518_v33, %s4740_s15 }
 0x4dd   : > { %v1887_v14 = vpop.xlane.xlu0 %1886 }
 0x4e1   : > { %v1851_v16 = vpop.xlane.xlu1 %1850 }
 0x4e2   : > { %4509 = vrcp.f32 %v1851_v16 }
 0x4e3   : > { %v1853_v1 = vpop.xlane.xlu0 %1852 }
 0x4e4   : > { %4511 = vrcp.f32 %v1853_v1 }
 0x4e5   : > { %4513 = vpow2.f32 %v1808_v43  ;;  %v1883_v38 = vpop.xlane.xlu1 %1882 }
 0x4e6   : > { %4515 = vrcp.f32 %v1883_v38 }
 0x4e7   : > { %4517 = vrcp.f32 %v1855_v40  ;;  %v1885_v37 = vpop.xlane.xlu0 %1884 }
 0x4e8   : > { %4519 = vrcp.f32 %v1885_v37 }
 0x4e9   : > { %4521 = vpow2.f32 %v1804_v11  ;;  %v1857_v28 = vpop.xlane.xlu1 %1856 }
 0x4ea   : > { %4523 = vrcp.f32 %v1857_v28  ;;  %v6520_v28 = vld [vmem:[#allocation18_spill] sm:$0xff] }
 0x4eb   : > { %v1863_v25 = vpop.xlane.xlu0 %1862  ;;  %4525 = vrcp.f32 %v1887_v14 }
 0x4ec   : > { %v4510_v26 = vpop.eup %4509  ;;  %4527 = vpow2.f32 %v1806_v47 }
 0x4ed   : > { %1930 = vadd.xlane.f32.xlu1 %v6069_v54  ;;  %v1889_v59 = vpop.xlane.xlu1 %1888  ;;  %v2026_v55 = vmul.f32 %v4510_v26, %v5874_v4  ;;  %v6519_v4 = vld [vmem:[#allocation39_spill] sm:$0xff] }
 0x4ee   : > { %v4512_v58 = vpop.eup %4511  ;;  %4529 = vrcp.f32 %v1889_v59 }
 0x4ef   : > { %v6072_v51 = vpop.eup %4513  ;;  %v1895_v44 = vpop.xlane.xlu0 %1894  ;;  %v2027_v13 = vmul.f32 %v4512_v58, %v5877_v5 }
 0x4f0   : > { %v4516_v3 = vpop.eup %4515 }
 0x4f1   : > { %v4518_v39 = vpop.eup %4517  ;;  %1936 = vadd.xlane.f32.xlu1 %v6072_v51  ;;  %v1859_v6 = vpop.xlane.xlu1 %1858  ;;  %v2082_v33 = vpack.c.bf16 %v2027_v13, %v2026_v55  ;;  %v2042_v21 = vmul.f32 %v4516_v3, %v5881_v10 }
 0x4f2   : > { %v4520_v45 = vpop.eup %4519  ;;  %4531 = vrcp.f32 %v1859_v6  ;;  %v2028_v5 = vmul.f32 %v4518_v39, %v6519_v4 }
 0x4f3   : > { %v6077_v40 = vpop.eup %4521  ;;  %v1861_v57 = vpop.xlane.xlu0 %1860  ;;  %3904 = vmatprep.mubr.bf16.mxu0 %v2082_v33  ;;  %v2043_v14 = vmul.f32 %v4520_v45, %v5886_v18 }
 0x4f4   : > { %v4524_v43 = vpop.eup %4523  ;;  %4533 = vrcp.f32 %v1861_v57 }
 0x4f5   : > { %v2029_v23 = vmul.f32 %v4524_v43, %v5890_v42  ;;  %1932 = vadd.xlane.f32.xlu0 %v6077_v40  ;;  %v1891_v16 = vpop.xlane.xlu1 %1890  ;;  %v2090_v1 = vpack.c.bf16 %v2043_v14, %v2042_v21  ;;  %v4526_v61 = vpop.eup %4525 }
 0x4f6   : > { %4535 = vrcp.f32 %v1891_v16  ;;  %v6084_v11 = vpop.eup %4527  ;;  %v2044_v18 = vmul.f32 %v4526_v61, %v5870_v22  ;;  %v6521_v22 = vld [vmem:[#allocation23_spill] sm:$0xff] }
 0x4f7   : > { %4537 = vrcp.f32 %v1863_v25  ;;  %v1893_v38 = vpop.xlane.xlu0 %1892  ;;  %3936 = vmatprep.mubr.bf16.mxu1 %v2090_v1  ;;  %v2083_v10 = vpack.c.bf16 %v2029_v23, %v2028_v5 }
 0x4f8   : > { %v4530_v37 = vpop.eup %4529  ;;  %4539 = vrcp.f32 %v1893_v38 }
 0x4f9   : > { %v2045_v47 = vmul.f32 %v4530_v37, %v5899_v36  ;;  %1934 = vadd.xlane.f32.xlu0 %v6084_v11  ;;  %3905 = vmatmul.mubr.bf16.vlgmr.msra.gmra.mrb[64].mxu0 %v2083_v10  ;;  %v1865_v42 = vpop.xlane.xlu1 %1864 }
 0x4fa   : > { %3953 = vmatpush3.bf16.msra.mxu0 %v6516_v30  ;;  %4541 = vrcp.f32 %v1865_v42  ;;  %v6524_v42 = vld [vmem:[#allocation11_spill] sm:$0xff] }
 0x4fb   : > { %3954 = vmatprep.subr.bf16.mxu0 %v6520_v28  ;;  %v1871_v26 = vpop.xlane.xlu0 %1870  ;;  %v2091_v25 = vpack.c.bf16 %v2045_v47, %v2044_v18  ;;  %4543 = vrcp.f32 %v1895_v44  ;;  %v6523_v18 = vld [vmem:[#allocation36_spill] sm:$0xff] }
 0x4fc   : > { %v4532_v59 = vpop.eup %4531  ;;  %v1686_v47 = vsub.f32 %v6523_v18, %v6059_v52 }
 0x4fd   : > { %3937 = vmatmul.mubr.bf16.vlgmr.msra.gmra.mrb[32].mxu1 %v2091_v25  ;;  %v1897_v58 = vpop.xlane.xlu1 %1896  ;;  %v2030_v13 = vmul.f32 %v4532_v59, %v5906_v53 }
 0x4fe   : > { %v4534_v55 = vpop.eup %4533  ;;  %4064 = vmatpush3.bf16.msra.mxu1 %v6516_v30  ;;  %3955 = vmatpush3.bf16.msra.mxu0 %v6520_v28  ;;  %4545 = vrcp.f32 %v1897_v58  ;;  %v6522_v30 = vld [vmem:[#allocation13_spill] sm:$0xff] }
 0x4ff   : > { %4057 = vmatprep.subr.bf16.mxu1 %v6520_v28  ;;  %3956 = vmatprep.subr.bf16.mxu0 %v6521_v22  ;;  %v1903_v36 = vpop.xlane.xlu0 %1902  ;;  %v2031_v3 = vmul.f32 %v4534_v55, %v5909_v60 }
 0x500   : > { %v4536_v39 = vpop.eup %4535 }
 0x501   : > { %v4538_v6 = vpop.eup %4537  ;;  %v1867_v44 = vpop.xlane.xlu1 %1866  ;;  %v2084_v33 = vpack.c.bf16 %v2031_v3, %v2030_v13  ;;  %v2046_v53 = vmul.f32 %v4536_v39, %v5913_v17  ;;  %v1810_v13 = vmul.f32 1.442695, %v1686_v47  ;;  %v6526_v3 = vld [vmem:[#allocation28_spill] sm:$0xff] }
 0x502   : > { %v4540_v45 = vpop.eup %4539  ;;  %4065 = vmatpush3.bf16.msra.mxu1 %v6520_v28  ;;  %3957 = vmatpush3.bf16.msra.mxu0 %v6521_v22  ;;  %4547 = vrcp.f32 %v1867_v44  ;;  %v2032_v4 = vmul.f32 %v4538_v6, %v5894_v8 }
 0x503   : > { %2481 = vrot.lane.b32.xlu1 %v6522_v30, %s4740_s15  ;;  %4058 = vmatprep.subr.bf16.mxu1 %v6521_v22  ;;  %v1869_v57 = vpop.xlane.xlu0 %1868  ;;  %v2047_v60 = vmul.f32 %v4540_v45, %v5918_v12  ;;  %v6528_v30 = vld [vmem:[#allocation29_spill] sm:$0xff] }
 0x504   : > { %v4542_v21 = vpop.eup %4541  ;;  %4549 = vrcp.f32 %v1869_v57  ;;  %3908 = vmatprep.mubr.bf16.mxu0 %v2084_v33 }
 0x505   : > { %v1899_v14 = vpop.xlane.xlu1 %1898  ;;  %v2092_v43 = vpack.c.bf16 %v2047_v60, %v2046_v53  ;;  %v2033_v5 = vmul.f32 %v4542_v21, %v5922_v20  ;;  %v4544_v23 = vpop.eup %4543 }
 0x506   : > { %4066 = vmatpush3.bf16.msra.mxu1 %v6521_v22  ;;  %4551 = vrcp.f32 %v1899_v14  ;;  %v2048_v61 = vmul.f32 %v4544_v23, %v5902_v24  ;;  %v6529_v14 = vld [vmem:[#allocation25_spill] sm:$0xff] }
 0x507   : > { %4553 = vrcp.f32 %v1871_v26  ;;  %v1901_v16 = vpop.xlane.xlu0 %1900  ;;  %3940 = vmatprep.mubr.bf16.mxu1 %v2092_v43  ;;  %v2085_v1 = vpack.c.bf16 %v2033_v5, %v2032_v4  ;;  %v6530_v5 = vld [vmem:[#allocation38_spill] sm:$0xff] }
 0x508   : > { %v4546_v17 = vpop.eup %4545  ;;  %4555 = vrcp.f32 %v1901_v16  ;;  %v1687_v23 = vsub.f32 %v6530_v5, %v6065_v2 }
 0x509   : > { %3909 = vmatmul.mubr.bf16.gmra.mrb[68].mxu0 %v2085_v1  ;;  %v1873_v12 = vpop.xlane.xlu1 %1872  ;;  %v2049_v38 = vmul.f32 %v4546_v17, %v5931_v41  ;;  %v6525_v41 = vld [vmem:[#allocation37_spill] sm:$0xff] }
 0x50a   : > { %4557 = vrcp.f32 %v1873_v12  ;;  %v1689_v25 = vsub.f32 %v6525_v41, %v6061_v31  ;;  %v6531_v12 = vld [vmem:[#allocation35_spill] sm:$0xff]  ;;  %v6532_v41 = vld [vmem:[#allocation26_spill] sm:$0xff] }
 0x50b   : > { %v2093_v8 = vpack.c.bf16 %v2049_v38, %v2048_v61  ;;  %4559 = vrcp.f32 %v1903_v36  ;;  %v1879_v58 = vpop.xlane.xlu0 %1878  ;;  %v1688_v61 = vsub.f32 %v6531_v12, %v6055_v62  ;;  %v1812_v38 = vmul.f32 1.442695, %v1687_v23  ;;  %v6536_v23 = vld [vmem:[#allocation12_spill] sm:$0xff] }
 0x50c   : > { %v4548_v10 = vpop.eup %4547  ;;  %v1816_v44 = vmul.f32 1.442695, %v1689_v25 }
 0x50d   : > { %3941 = vmatmul.mubr.bf16.gmra.mrb[36].mxu1 %v2093_v8  ;;  %v1905_v20 = vpop.xlane.xlu1 %1904  ;;  %v2034_v28 = vmul.f32 %v4548_v10, %v5939_v0 }
 0x50e   : > { %v4550_v37 = vpop.eup %4549  ;;  %4561 = vrcp.f32 %v1905_v20  ;;  %v1814_v20 = vmul.f32 1.442695, %v1688_v61 }
 0x50f   : > { %2479 = vrot.lane.b32.xlu0 %v6524_v42, %s4740_s15  ;;  %v2035_v24 = vmul.f32 %v4550_v37, %v5942_v19  ;;  %v6527_v19 = vld [vmem:[#allocation27_spill] sm:$0xff]  ;;  %4563 = vpow2.f32 %v1810_v13  ;;  %v1911_v53 = vpop.xlane.xlu0 %1910 }
 0x510   : > { %v4552_v26 = vpop.eup %4551  ;;  %4565 = vpow2.f32 %v1816_v44 }
 0x511   : > { %v4554_v59 = vpop.eup %4553  ;;  %v1875_v55 = vpop.xlane.xlu1 %1874  ;;  %v2086_v22 = vpack.c.bf16 %v2035_v24, %v2034_v28  ;;  %v2050_v52 = vmul.f32 %v4552_v26, %v5946_v50 }
 0x512   : > { %v4556_v36 = vpop.eup %4555  ;;  %v2036_v45 = vmul.f32 %v4554_v59, %v6527_v19  ;;  %4567 = vrcp.f32 %v1875_v55 }
 0x513   : > { %3912 = vmatprep.mubr.bf16.mxu0 %v2086_v22  ;;  %v2051_v39 = vmul.f32 %v4556_v36, %v6526_v3  ;;  %v6533_v36 = vld [vmem:[#allocation32_spill] sm:$0xff] }
 0x514   : > { %v4558_v6 = vpop.eup %4557 }
 0x515   : > { %v1907_v0 = vpop.xlane.xlu1 %1906  ;;  %v2094_v33 = vpack.c.bf16 %v2051_v39, %v2050_v52  ;;  %v2037_v57 = vmul.f32 %v4558_v6, %v6528_v30  ;;  %v4560_v31 = vpop.eup %4559 }
 0x516   : > { %v2052_v43 = vmul.f32 %v4560_v31, %v6529_v14 }
 0x517   : > { %3944 = vmatprep.mubr.bf16.mxu1 %v2094_v33  ;;  %v2087_v60 = vpack.c.bf16 %v2037_v57, %v2036_v45 }
 0x518   : > { %v4562_v21 = vpop.eup %4561 }
 0x519   : > { %3913 = vmatmul.mubr.bf16.gmra.mrb[72].mxu0 %v2087_v60  ;;  %v1881_v50 = vpop.xlane.xlu1 %1880  ;;  %v2053_v4 = vmul.f32 %v4562_v21, %v5962_v46  ;;  %v6127_v46 = vpop.eup %4563 }
 0x51a   : > { %4569 = vrcp.f32 %v1881_v50  ;;  %v6129_v10 = vpop.eup %4565 }
 0x51b   : > { %4571 = vrcp.f32 %v1879_v58  ;;  %v1877_v16 = vpop.xlane.xlu0 %1876  ;;  %v2095_v1 = vpack.c.bf16 %v2053_v4, %v2052_v43 }
 0x51c   : > { %4573 = vrcp.f32 %v1877_v16  ;;  %v4568_v2 = vpop.eup %4567 }
 0x51d   : > { %4575 = vrcp.f32 %v1907_v0  ;;  %3945 = vmatmul.mubr.bf16.gmra.mrb[40].mxu1 %v2095_v1  ;;  %v1913_v17 = vpop.xlane.xlu1 %1912  ;;  %v2038_v62 = vmul.f32 %v4568_v2, %v5969_v48  ;;  %v6535_v48 = vld [vmem:[#allocation30_spill] sm:$0xff] }
 0x51e   : > { %4577 = vrcp.f32 %v1913_v17 }
 0x51f   : > { %4579 = vrcp.f32 %v1911_v53  ;;  %v1909_v8 = vpop.xlane.xlu0 %1908 }
 0x520   : > { %4581 = vrcp.f32 %v1909_v8 }
 0x521   : > { %4583 = vpow2.f32 %v1812_v38 }
 0x522   : > { %4585 = vpow2.f32 %v1814_v20 }
 0x524   : > { %v4570_v37 = vpop.eup %4569 }
 0x525   : > { %v4572_v18 = vpop.eup %4571  ;;  %v2041_v42 = vmul.f32 %v4570_v37, %v5976_v34  ;;  %v6534_v34 = vld [vmem:[#allocation31_spill] sm:$0xff] }
 0x526   : > { %v4574_v47 = vpop.eup %4573  ;;  %v2040_v25 = vmul.f32 %v4572_v18, %v6532_v41 }
 0x527   : > { %v4576_v28 = vpop.eup %4575  ;;  %1938 = vadd.xlane.f32.xlu1 %v6127_v46  ;;  %v2039_v24 = vmul.f32 %v4574_v47, %v5979_v15 }
 0x528   : > { %v4578_v26 = vpop.eup %4577  ;;  %v2089_v22 = vpack.c.bf16 %v2041_v42, %v2040_v25  ;;  %v2054_v52 = vmul.f32 %v4576_v28, %v6534_v34 }
 0x529   : > { %v4580_v59 = vpop.eup %4579  ;;  %v2088_v58 = vpack.c.bf16 %v2039_v24, %v2038_v62  ;;  %v2057_v13 = vmul.f32 %v4578_v26, %v6533_v36  ;;  %v1919_v6 = vpop.xlane.xlu0 %1918 }
 0x52a   : > { %v4582_v55 = vpop.eup %4581  ;;  %v2056_v39 = vmul.f32 %v4580_v59, %v6535_v48  ;;  %4587 = vrcp.f32 %v1919_v6 }
 0x52b   : > { %1944 = vadd.xlane.f32.xlu1 %v6129_v10  ;;  %3916 = vmatprep.mubr.bf16.mxu0 %v2088_v58  ;;  %v2055_v3 = vmul.f32 %v4582_v55, %v5986_v32  ;;  %v6141_v15 = vpop.eup %4583 }
 0x52c   : > { %3917 = vmatmul.mubr.bf16.gmra.mrb[76].mxu0 %v2089_v22  ;;  %v2097_v33 = vpack.c.bf16 %v2057_v13, %v2056_v39  ;;  %v6144_v19 = vpop.eup %4585 }
 0x52d   : > { %v1915_v44 = vpop.xlane.xlu1 %1914  ;;  %v2096_v0 = vpack.c.bf16 %v2055_v3, %v2054_v52 }
 0x52e   : > { %1940 = vadd.xlane.f32.xlu0 %v6141_v15 }
 0x52f   : > { %3948 = vmatprep.mubr.bf16.mxu1 %v2096_v0 }
 0x530   : > { %3949 = vmatmul.mubr.bf16.gmra.mrb[44].mxu1 %v2097_v33 }
 0x531   : > { %v1921_v45 = vpop.xlane.xlu1 %1920 }
 0x532   : > { %4589 = vrcp.f32 %v1921_v45  ;;  %1942 = vadd.xlane.f32.xlu0 %v6144_v19 }
 0x533   : > { %4591 = vrcp.f32 %v1915_v44 }
 0x534   : > { %v4588_v30 = vpop.eup %4587 }
 0x535   : > { %v1917_v32 = vpop.xlane.xlu0 %1916  ;;  %v6148_v31 = vmul.f32 %v4588_v30, %v5996_v27 }
 0x536   : > { %4593 = vrcp.f32 %v1917_v32 }
 0x53c   : > { %v4590_v57 = vpop.eup %4589 }
 0x53d   : > { %v6151_v53 = vmul.f32 %v4590_v57, %v6008_v29  ;;  %v4592_v60 = vpop.eup %4591 }
 0x53e   : > { %v2058_v14 = vmul.f32 %v4592_v60, %v6002_v56 }
 0x53f   : > { %v2099_v21 = vpack.c.bf16 %v6151_v53, %v6148_v31 }
 0x540   : > { %v4594_v50 = vpop.eup %4593 }
 0x541   : > { %v2059_v43 = vmul.f32 %v4594_v50, %v6017_v49  ;;  %v1923_v4 = vpop.xlane.xlu1 %1922 }
 0x542   : > { %4595 = vrcp.f32 %v1923_v4 }
 0x543   : > { %v2098_v5 = vpack.c.bf16 %v2059_v43, %v2058_v14 }
 0x545   : > { %3968 = vmatprep.mubr.bf16.mxu0 %v2098_v5  ;;  %v1929_v27 = vpop.xlane.xlu1 %1928 }
 0x548   : > { %2483 = vrot.lane.b32.xlu0 %v6536_v23, %s4740_s15  ;;  %s3291_s15 = sshll.u32 %s6332_s13, 4  ;;  %s6354_s15 = int_to_ptr.vmem [resolvable:$true] %s3291_s15 }
 0x549   : > { %v1925_v16 = vpop.xlane.xlu0 %1924  ;;  %v2478_v56 = vpop.permute.xlu1 %2477  ;;  %s4649_s10 = scalar_lea.vmem %s6354_s15, 2048  ;;  %p4656_p6 = scmp.lt.s32.totalorder %s6354_s15, %s4654_s16 }
 0x54a   : > { %4597 = vrcp.f32 %v1925_v16  ;;  %p4650_p8 = scmp.ne.s32.totalorder %s6354_s15, %s4649_s10  ;;  %p4657_p13 = scmp.lt.s32.totalorder %s4655_s17, %s4649_s10 }
 0x54b   : > { %4599 = vrcp.f32 %v1929_v27 }
 0x54c   : > { %v4596_v17 = vpop.eup %4595  ;;  %p4651_p11 = pnand %p4650_p8, %p6537_p9  ;;  %p4658_p2 = por %p4657_p13, %p4656_p6 }
 0x54d   : > { %v1927_v29 = vpop.xlane.xlu0 %1926  ;;  %v6160_v12 = vmul.f32 %v4596_v17, %v6034_v63 }
 0x54e   : > { %4601 = vrcp.f32 %v1927_v29  ;;  %p4652_p0 = pneg %p4651_p11 }
 0x550   : > { %p4659_p5 = pnand %p4658_p2, %p4652_p0 }
 0x551   : > { %v2476_v1 = vpop.permute.xlu0 %2475 }
 0x552   : > { %3958 = vmatprep.subr.bf16.mxu0 %v2476_v1  ;;  %4059 = vmatprep.subr.bf16.mxu1 %v2476_v1 }
 0x553   : > { %3959 = vmatpush3.bf16.msra.mxu0 %v2476_v1  ;;  %4067 = vmatpush3.bf16.msra.mxu1 %v2476_v1 }
 0x554   : > { %v4598_v49 = vpop.eup %4597  ;;  %3960 = vmatprep.subr.bf16.mxu0 %v2478_v56  ;;  %4060 = vmatprep.subr.bf16.mxu1 %v2478_v56 }
 0x555   : > { %v6163_v61 = vmul.f32 %v4598_v49, %v6045_v7  ;;  %v4600_v38 = vpop.eup %4599 }
 0x556   : > { %v6171_v37 = vmul.f32 %v4600_v38, %v6040_v9 }
 0x557   : > { %3961 = vmatpush3.bf16.msra.mxu0 %v2478_v56  ;;  %4068 = vmatpush3.bf16.msra.mxu1 %v2478_v56  ;;  %v2100_v8 = vpack.c.bf16 %v6163_v61, %v6160_v12 }
 0x558   : > { %v4602_v2 = vpop.eup %4601 }
 0x559   : > { %v6168_v20 = vmul.f32 %v4602_v2, %v6050_v35 }
 0x55b   : > { %v2101_v63 = vpack.c.bf16 %v6171_v37, %v6168_v20  ;;  %v2624_v20 = vld [vmem:[%s6409_s3 + $0x8] sm:$0xf] }
 0x572   : > { %v6175_v18 = vpop.f32.mrb[16].mxu1 }
 0x573   : > { %v6177_v7 = vpop.f32.mrb[17].mxu1 }
 0x574   : > { %v6179_v47 = vpop.f32.mrb[18].mxu1 }
 0x575   : > { %v2591_v42 = vpack.c.bf16 %v6179_v47, %v6175_v18  ;;  %v6183_v28 = vpop.f32.mrb[19].mxu1 }
 0x576   : > { %v2590_v35 = vpack.c.bf16 %v6183_v28, %v6177_v7 }
 0x57a   : > { %v6187_v62 = vpop.f32.mrb[20].mxu1  ;;  %v1931_v25 = vpop.xlane.xlu1 %1930 }
 0x57b   : > { %v6189_v9 = vpop.f32.mrb[21].mxu1  ;;  %4603 = vrcp.f32 %v1931_v25 }
 0x57c   : > { %v6191_v24 = vpop.f32.mrb[22].mxu1 }
 0x57d   : > { %v2593_v26 = vpack.c.bf16 %v6191_v24, %v6187_v62  ;;  %v6195_v41 = vpop.f32.mrb[23].mxu1 }
 0x57e   : > { %v2592_v59 = vpack.c.bf16 %v6195_v41, %v6189_v9  ;;  %v1937_v52 = vpop.xlane.xlu1 %1936 }
 0x582   : > { %v6199_v58 = vpop.f32.mrb[24].mxu1  ;;  %v1933_v55 = vpop.xlane.xlu0 %1932 }
 0x583   : > { %4605 = vrcp.f32 %v1933_v55  ;;  %v6201_v22 = vpop.f32.mrb[25].mxu1  ;;  %v2482_v33 = vpop.permute.xlu1 %2481  ;;  %v2623_v55 = vld [vmem:[%s6409_s3 + $0x4] sm:$0xf] }
 0x584   : > { %v6203_v36 = vpop.f32.mrb[26].mxu1 }
 0x585   : > { %v2595_v13 = vpack.c.bf16 %v6203_v36, %v6199_v58  ;;  %v6207_v34 = vpop.f32.mrb[27].mxu1  ;;  %v4604_v44 = vpop.eup %4603 }
 0x586   : > { %v2594_v3 = vpack.c.bf16 %v6207_v34, %v6201_v22  ;;  %v1935_v48 = vpop.xlane.xlu0 %1934  ;;  %v2066_v50 = vmul.f32 %v4604_v44, %v6069_v54 }
 0x587   : > { %4607 = vrcp.f32 %v1935_v48 }
 0x588   : > { %4609 = vrcp.f32 %v1937_v52 }
 0x58a   : > { %v6211_v39 = vpop.f32.mrb[28].mxu1  ;;  %v2480_v6 = vpop.permute.xlu0 %2479 }
 0x58b   : > { %v6213_v0 = vpop.f32.mrb[29].mxu1  ;;  %3962 = vmatprep.subr.bf16.mxu0 %v2480_v6  ;;  %4061 = vmatprep.subr.bf16.mxu1 %v2480_v6 }
 0x58c   : > { %v6215_v45 = vpop.f32.mrb[30].mxu1  ;;  %3963 = vmatpush3.bf16.msra.mxu0 %v2480_v6  ;;  %4069 = vmatpush3.bf16.msra.mxu1 %v2480_v6 }
 0x58d   : > { %v4606_v32 = vpop.eup %4605  ;;  %v2597_v30 = vpack.c.bf16 %v6215_v45, %v6211_v39  ;;  %v6219_v57 = vpop.f32.mrb[31].mxu1  ;;  %3964 = vmatprep.subr.bf16.mxu0 %v2482_v33  ;;  %4062 = vmatprep.subr.bf16.mxu1 %v2482_v33 }
 0x58e   : > { %v2596_v60 = vpack.c.bf16 %v6219_v57, %v6213_v0  ;;  %v2067_v14 = vmul.f32 %v4606_v32, %v6077_v40  ;;  %v2622_v40 = vld [vmem:[%s6409_s3] sm:$0xf] }
 0x58f   : > { %v2652_v2 = vsel %vm2650_vm2, %v2622_v40, 0 }
 0x590   : > { %3965 = vmatpush3.bf16.msra.mxu0 %v2482_v33  ;;  %4070 = vmatpush3.bf16.msra.mxu1 %v2482_v33  ;;  %v2102_v43 = vpack.c.bf16 %v2067_v14, %v2066_v50  ;;  %v2776_v14 = vsel %vm2650_vm2, %v2623_v55, 0 }
 0x591   : > { %v4608_v27 = vpop.eup %4607 }
 0x592   : > { %3976 = vmatprep.mubr.bf16.mxu1 %v2102_v43  ;;  %v4610_v29 = vpop.eup %4609  ;;  %v2068_v54 = vmul.f32 %v4608_v27, %v6084_v11 }
 0x593   : > { %v2069_v56 = vmul.f32 %v4610_v29, %v6072_v51 }
 0x595   : > { %v2103_v38 = vpack.c.bf16 %v2069_v56, %v2068_v54 }
 0x5b4   : > { %v1939_v4 = vpop.xlane.xlu1 %1938 }
 0x5b5   : > { %4611 = vrcp.f32 %v1939_v4 }
 0x5b8   : > { %v1945_v5 = vpop.xlane.xlu1 %1944 }
 0x5bb   : > { %v1941_v23 = vpop.xlane.xlu0 %1940 }
 0x5bc   : > { %4613 = vrcp.f32 %v1941_v23 }
 0x5bd   : > { %4615 = vrcp.f32 %v1945_v5  ;;  %v2625_v5 = vld [vmem:[%s6409_s3 + $0xc] sm:$0xf] }
 0x5bf   : > { %v1943_v16 = vpop.xlane.xlu0 %1942  ;;  %v4612_v17 = vpop.eup %4611 }
 0x5c0   : > { %4617 = vrcp.f32 %v1943_v16  ;;  %v2070_v11 = vmul.f32 %v4612_v17, %v6127_v46 }
 0x5c3   : > { %v2484_v1 = vpop.permute.xlu0 %2483 }
 0x5c4   : > { %3966 = vmatprep.subr.bf16.mxu0 %v2484_v1  ;;  %4063 = vmatprep.subr.bf16.mxu1 %v2484_v1 }
 0x5c5   : > { %3967 = vmatpush3.bf16.msra.mxu0 %v2484_v1  ;;  %4071 = vmatpush3.bf16.msra.mxu1 %v2484_v1 }
 0x5c6   : > { %v4614_v49 = vpop.eup %4613  ;;  %4152 = vmatprep.subr.msk.bf16.mxu1 %vm2650_vm2, %v2622_v40 }
 0x5c7   : > { %v2071_v25 = vmul.f32 %v4614_v49, %v6141_v15  ;;  %v4616_v52 = vpop.eup %4615  ;;  %v3024_v49 = vsel %vm2650_vm2, %v2625_v5, 0 }
 0x5c8   : > { %3969 = vmatmul.mubr.bf16.vlgmr.msra.gmra.mrb[80].mxu0 %v2099_v21  ;;  %3977 = vmatmul.mubr.bf16.vlgmr.msra.gmra.mrb[48].mxu1 %v2103_v38  ;;  %v2073_v15 = vmul.f32 %v4616_v52, %v6129_v10 }
 0x5c9   : > { %3972 = vmatprep.mubr.bf16.mxu0 %v2100_v8  ;;  %v2104_v51 = vpack.c.bf16 %v2071_v25, %v2070_v11  ;;  %3985 = vmatpush3.bf16.msra.mxu1 %v2652_v2 }
 0x5ca   : > { %v4618_v48 = vpop.eup %4617  ;;  %4153 = vmatprep.subr.msk.bf16.mxu1 %vm2650_vm2, %v2623_v55 }
 0x5cb   : > { %3980 = vmatprep.mubr.bf16.mxu1 %v2104_v51  ;;  %v2072_v46 = vmul.f32 %v4618_v48, %v6144_v19 }
 0x5cc   : > { %v3906_v6 = vpop.f32.mrb[64].mxu0 }
 0x5cd   : > { %v2285_v44 = vpop.f32.mrb[65].mxu0  ;;  %v2105_v33 = vpack.c.bf16 %v2073_v15, %v2072_v46 }
 0x5ce   : > { %v3907_v31 = vpop.f32.mrb[66].mxu0 }
 0x5cf   : > { %v2599_v53 = vpack.c.bf16 %v3907_v31, %v3906_v6  ;;  %v2288_v21 = vpop.f32.mrb[67].mxu0 }
 0x5d0   : > { %v2598_v32 = vpack.c.bf16 %v2288_v21, %v2285_v44  ;;  %v6246_v50 = vpop.f32.mrb[32].mxu1  ;;  %3973 = vmatmul.mubr.bf16.gmra.mrb[84].mxu0 %v2101_v63  ;;  %3981 = vmatmul.mubr.bf16.gmra.mrb[52].mxu1 %v2105_v33 }
 0x5d1   : > { %v6251_v12 = vpop.f32.mrb[33].mxu1  ;;  %3986 = vmatprep.mubr.msk.bf16.mxu1 %vm778_vm0, %v2590_v35 }
 0x5d2   : > { %v6257_v10 = vpop.f32.mrb[34].mxu1 }
 0x5d3   : > { %v2607_v19 = vpack.c.bf16 %v6257_v10, %v6246_v50  ;;  %v2409_v61 = vpop.f32.mrb[35].mxu1 }
 0x5d4   : > { %v2606_v8 = vpack.c.bf16 %v2409_v61, %v6251_v12 }
 0x5d8   : > { %3987 = vmatmul.mubr.msk.bf16.vlgmr.msra.gmra.mrb[56].mxu1 %vm778_vm0, %v2591_v42 }
 0x5d9   : > { %3990 = vmatprep.mubr.msk.bf16.mxu1 %vm778_vm0, %v2592_v59  ;;  %4003 = vmatpush3.bf16.msra.mxu1 %v2776_v14 }
 0x5da   : > { %4154 = vmatprep.subr.msk.bf16.mxu1 %vm2650_vm2, %v2624_v20 }
 0x5dc   : > { %v3910_v37 = vpop.f32.mrb[68].mxu0 }
 0x5dd   : > { %v2301_v63 = vpop.f32.mrb[69].mxu0 }
 0x5de   : > { %v3911_v7 = vpop.f32.mrb[70].mxu0 }
 0x5df   : > { %v2601_v28 = vpack.c.bf16 %v3911_v7, %v3910_v37  ;;  %v2304_v35 = vpop.f32.mrb[71].mxu0 }
 0x5e0   : > { %v2600_v43 = vpack.c.bf16 %v2304_v35, %v2301_v63  ;;  %v3942_v4 = vpop.f32.mrb[36].mxu1  ;;  %3991 = vmatmul.mubr.msk.bf16.gmra.mrb[60].mxu1 %vm778_vm0, %v2593_v26 }
 0x5e1   : > { %v2422_v18 = vpop.f32.mrb[37].mxu1  ;;  %3994 = vmatprep.mubr.msk.bf16.mxu1 %vm778_vm0, %v2594_v3 }
 0x5e2   : > { %v3943_v47 = vpop.f32.mrb[38].mxu1 }
 0x5e3   : > { %v2609_v42 = vpack.c.bf16 %v3943_v47, %v3942_v4  ;;  %v2425_v9 = vpop.f32.mrb[39].mxu1 }
 0x5e4   : > { %v2608_v41 = vpack.c.bf16 %v2425_v9, %v2422_v18 }
 0x5e8   : > { %3995 = vmatmul.mubr.msk.bf16.gmra.mrb[64].mxu1 %vm778_vm0, %v2595_v13 }
 0x5e9   : > { %3998 = vmatprep.mubr.msk.bf16.mxu1 %vm778_vm0, %v2596_v60  ;;  %v2900_v60 = vsel %vm2650_vm2, %v2624_v20, 0  ;;  %v3508_v20 = vld [vmem:[%s6410_s4] ss:$0 sm:$0xff] }
 0x5ec   : > { %v3914_v62 = vpop.f32.mrb[72].mxu0 }
 0x5ed   : > { %v2317_v24 = vpop.f32.mrb[73].mxu0 }
 0x5ee   : > { %v3915_v26 = vpop.f32.mrb[74].mxu0 }
 0x5ef   : > { %v2603_v59 = vpack.c.bf16 %v3915_v26, %v3914_v62  ;;  %v2320_v22 = vpop.f32.mrb[75].mxu0 }
 0x5f0   : > { %v2602_v34 = vpack.c.bf16 %v2320_v22, %v2317_v24  ;;  %v3946_v3 = vpop.f32.mrb[40].mxu1  ;;  %3999 = vmatmul.mubr.msk.bf16.gmra.mrb[68].mxu1 %vm778_vm0, %v2597_v30 }
 0x5f1   : > { %v2438_v58 = vpop.f32.mrb[41].mxu1  ;;  %4004 = vmatprep.mubr.msk.bf16.mxu1 %vm778_vm0, %v2598_v32 }
 0x5f2   : > { %v3947_v36 = vpop.f32.mrb[42].mxu1 }
 0x5f3   : > { %v2611_v13 = vpack.c.bf16 %v3947_v36, %v3946_v3  ;;  %v2441_v0 = vpop.f32.mrb[43].mxu1 }
 0x5f4   : > { %v2610_v57 = vpack.c.bf16 %v2441_v0, %v2438_v58 }
 0x5f8   : > { %4005 = vmatmul.mubr.msk.bf16.vlgmr.msra.gmra.mrb[56].mxu1 %vm778_vm0, %v2599_v53 }
 0x5f9   : > { %4008 = vmatprep.mubr.msk.bf16.mxu1 %vm778_vm0, %v2600_v43  ;;  %4021 = vmatpush3.bf16.msra.mxu1 %v2900_v60 }
 0x5fa   : > { %4155 = vmatprep.subr.msk.bf16.mxu1 %vm2650_vm2, %v2625_v5 }
 0x5ff   : > { %v3918_v39 = vpop.f32.mrb[76].mxu0 }
 0x600   : > { %v2333_v45 = vpop.f32.mrb[77].mxu0  ;;  %4009 = vmatmul.mubr.msk.bf16.gmra.mrb[60].mxu1 %vm778_vm0, %v2601_v28 }
 0x601   : > { %v3919_v30 = vpop.f32.mrb[78].mxu0  ;;  %4012 = vmatprep.mubr.msk.bf16.mxu1 %vm778_vm0, %v2602_v34 }
 0x602   : > { %v2605_v23 = vpack.c.bf16 %v3919_v30, %v3918_v39  ;;  %v2336_v27 = vpop.f32.mrb[79].mxu0 }
 0x603   : > { %v2604_v16 = vpack.c.bf16 %v2336_v27, %v2333_v45  ;;  %v3950_v29 = vpop.f32.mrb[44].mxu1 }
 0x604   : > { %v2454_v54 = vpop.f32.mrb[45].mxu1 }
 0x605   : > { %v3951_v1 = vpop.f32.mrb[46].mxu1 }
 0x606   : > { %v2613_v40 = vpack.c.bf16 %v3951_v1, %v3950_v29  ;;  %v2457_v17 = vpop.f32.mrb[47].mxu1 }
 0x607   : > { %v2612_v56 = vpack.c.bf16 %v2457_v17, %v2454_v54 }
 0x608   : > { %4013 = vmatmul.mubr.msk.bf16.gmra.mrb[64].mxu1 %vm778_vm0, %v2603_v59 }
 0x609   : > { %4016 = vmatprep.mubr.msk.bf16.mxu1 %vm778_vm0, %v2604_v16 }
 0x610   : > { %4017 = vmatmul.mubr.msk.bf16.gmra.mrb[68].mxu1 %vm778_vm0, %v2605_v23 }
 0x611   : > { %4022 = vmatprep.mubr.msk.bf16.mxu1 %vm778_vm0, %v2606_v8 }
 0x618   : > { %4023 = vmatmul.mubr.msk.bf16.vlgmr.msra.gmra.mrb[56].mxu1 %vm778_vm0, %v2607_v19 }
 0x619   : > { %4026 = vmatprep.mubr.msk.bf16.mxu1 %vm778_vm0, %v2608_v41  ;;  %4039 = vmatpush3.bf16.msra.mxu1 %v3024_v49 }
 0x620   : > { %4027 = vmatmul.mubr.msk.bf16.gmra.mrb[60].mxu1 %vm778_vm0, %v2609_v42 }
 0x621   : > { %4030 = vmatprep.mubr.msk.bf16.mxu1 %vm778_vm0, %v2610_v57 }
 0x628   : > { %4031 = vmatmul.mubr.msk.bf16.gmra.mrb[64].mxu1 %vm778_vm0, %v2611_v13 }
 0x629   : > { %4034 = vmatprep.mubr.msk.bf16.mxu1 %vm778_vm0, %v2612_v56 }
 0x630   : > { %4035 = vmatmul.mubr.msk.bf16.gmra.mrb[68].mxu1 %vm778_vm0, %v2613_v40 }
 0x69b   : > { %v3970_v38 = vpop.f32.mrb[80].mxu0  ;;  %v3978_v2 = vpop.f32.mrb[48].mxu1 }
 0x69c   : > { %v2527_v11 = vpop.f32.mrb[81].mxu0  ;;  %v2559_v25 = vpop.f32.mrb[49].mxu1 }
 0x69d   : > { %v3971_v55 = vpop.f32.mrb[82].mxu0  ;;  %v3979_v52 = vpop.f32.mrb[50].mxu1 }
 0x69e   : > { %v2615_v51 = vpack.c.bf16 %v3971_v55, %v3970_v38  ;;  %v2619_v48 = vpack.c.bf16 %v3979_v52, %v3978_v2  ;;  %v2530_v46 = vpop.f32.mrb[83].mxu0  ;;  %v2562_v15 = vpop.f32.mrb[51].mxu1 }
 0x69f   : > { %v2614_v6 = vpack.c.bf16 %v2530_v46, %v2527_v11  ;;  %v2618_v44 = vpack.c.bf16 %v2562_v15, %v2559_v25 }
 0x6a1   : > { %4040 = vmatprep.mubr.msk.bf16.mxu1 %vm778_vm0, %v2614_v6 }
 0x6a2   : > { %4041 = vmatmul.mubr.msk.bf16.vlgmr.msra.gmra.mrb[56].mxu1 %vm778_vm0, %v2615_v51 }
 0x6a3   : > { %v3974_v33 = vpop.f32.mrb[84].mxu0  ;;  %v3982_v31 = vpop.f32.mrb[52].mxu1 }
 0x6a4   : > { %v2543_v53 = vpop.f32.mrb[85].mxu0  ;;  %v2575_v21 = vpop.f32.mrb[53].mxu1 }
 0x6a5   : > { %v3975_v32 = vpop.f32.mrb[86].mxu0  ;;  %v3983_v50 = vpop.f32.mrb[54].mxu1 }
 0x6a6   : > { %v2617_v12 = vpack.c.bf16 %v3975_v32, %v3974_v33  ;;  %v2621_v10 = vpack.c.bf16 %v3983_v50, %v3982_v31  ;;  %v2546_v19 = vpop.f32.mrb[87].mxu0  ;;  %v2578_v61 = vpop.f32.mrb[55].mxu1 }
 0x6a7   : > { %v2616_v8 = vpack.c.bf16 %v2546_v19, %v2543_v53  ;;  %v2620_v14 = vpack.c.bf16 %v2578_v61, %v2575_v21 }
 0x6a9   : > { %4044 = vmatprep.mubr.msk.bf16.mxu1 %vm778_vm0, %v2616_v8 }
 0x6aa   : > { %4045 = vmatmul.mubr.msk.bf16.gmra.mrb[60].mxu1 %vm778_vm0, %v2617_v12 }
 0x6ab   : > { %4048 = vmatprep.mubr.msk.bf16.mxu1 %vm778_vm0, %v2618_v44 }
 0x6b2   : > { %4049 = vmatmul.mubr.msk.bf16.gmra.mrb[64].mxu1 %vm778_vm0, %v2619_v48 }
 0x6b3   : > { %4052 = vmatprep.mubr.msk.bf16.mxu1 %vm778_vm0, %v2620_v14 }
 0x6ba   : > { %4053 = vmatmul.mubr.msk.bf16.gmra.mrb[68].mxu1 %vm778_vm0, %v2621_v10 }
 0x775   : > { %v4042_v37 = vpop.f32.mrb[56].mxu1 }
 0x776   : > { %v3247_v63 = vadd.f32 %v4042_v37, %v3508_v20  ;;  %v3060_v7 = vpop.f32.mrb[57].mxu1 }
 0x777   : > { %v3245_v28 = vadd.f32 %v3508_v20, %v3060_v7  ;;  %v4043_v35 = vpop.f32.mrb[58].mxu1 }
 0x778   : > { %3263 = vst [vmem:[%s6332_s13 + $0x10] sm:$0xff] %v3247_v63  ;;  %v3248_v43 = vadd.f32 %v4043_v35, %v3508_v20  ;;  %v3063_v4 = vpop.f32.mrb[59].mxu1 }
 0x779   : > { %3261 = vst [vmem:[%s6332_s13] sm:$0xff] %v3245_v28  ;;  %v3246_v18 = vadd.f32 %v3508_v20, %v3063_v4 }
 0x77a   : > { %3264 = vst [vmem:[%s6332_s13 + $0x18] sm:$0xff] %v3248_v43 }
 0x77b   : > { %3262 = vst [vmem:[%s6332_s13 + $0x8] sm:$0xff] %v3246_v18 }
 0x77d   : > { %v4046_v47 = vpop.f32.mrb[60].mxu1 }
 0x77e   : > { %v3251_v42 = vadd.f32 %v4046_v47, %v3508_v20  ;;  %v3076_v9 = vpop.f32.mrb[61].mxu1 }
 0x77f   : > { %v3249_v41 = vadd.f32 %v3508_v20, %v3076_v9  ;;  %v4047_v62 = vpop.f32.mrb[62].mxu1 }
 0x780   : > { %3267 = vst [vmem:[%s6332_s13 + $0x30] sm:$0xff] %v3251_v42  ;;  %v3252_v24 = vadd.f32 %v4047_v62, %v3508_v20  ;;  %v3079_v26 = vpop.f32.mrb[63].mxu1 }
 0x781   : > { %3265 = vst [vmem:[%s6332_s13 + $0x20] sm:$0xff] %v3249_v41  ;;  %v3250_v59 = vadd.f32 %v3508_v20, %v3079_v26 }
 0x782   : > { %3268 = vst [vmem:[%s6332_s13 + $0x38] sm:$0xff] %v3252_v24 }
 0x783   : > { %3266 = vst [vmem:[%s6332_s13 + $0x28] sm:$0xff] %v3250_v59 }
 0x785   : > { %v4050_v22 = vpop.f32.mrb[64].mxu1 }
 0x786   : > { %v3255_v34 = vadd.f32 %v4050_v22, %v3508_v20  ;;  %v3092_v3 = vpop.f32.mrb[65].mxu1 }
 0x787   : > { %v3253_v58 = vadd.f32 %v3508_v20, %v3092_v3  ;;  %v4051_v36 = vpop.f32.mrb[66].mxu1 }
 0x788   : > { %3271 = vst [vmem:[%s6332_s13 + $0x50] sm:$0xff] %v3255_v34  ;;  %v3256_v13 = vadd.f32 %v4051_v36, %v3508_v20  ;;  %v3095_v0 = vpop.f32.mrb[67].mxu1 }
 0x789   : > { %3269 = vst [vmem:[%s6332_s13 + $0x40] sm:$0xff] %v3253_v58  ;;  %v3254_v57 = vadd.f32 %v3508_v20, %v3095_v0 }
 0x78a   : > { %3272 = vst [vmem:[%s6332_s13 + $0x58] sm:$0xff] %v3256_v13 }
 0x78b   : > { %3270 = vst [vmem:[%s6332_s13 + $0x48] sm:$0xff] %v3254_v57 }
 0x78d   : > { %v4054_v60 = vpop.f32.mrb[68].mxu1 }
 0x78e   : > { %v3259_v5 = vadd.f32 %v4054_v60, %v3508_v20  ;;  %v3108_v39 = vpop.f32.mrb[69].mxu1 }
 0x78f   : > { %v3257_v45 = vadd.f32 %v3508_v20, %v3108_v39  ;;  %v4055_v30 = vpop.f32.mrb[70].mxu1 }
 0x790   : > { %3275 = vst [vmem:[%s6332_s13 + $0x70] sm:$0xff] %v3259_v5  ;;  %v3260_v23 = vadd.f32 %v4055_v30, %v3508_v20  ;;  %v3111_v27 = vpop.f32.mrb[71].mxu1 }
 0x791   : > { %3273 = vst [vmem:[%s6332_s13 + $0x60] sm:$0xff] %v3257_v45  ;;  %v3258_v16 = vadd.f32 %v3508_v20, %v3111_v27 }
 0x792   : > { %3276 = vst [vmem:[%s6332_s13 + $0x78] sm:$0xff] %v3260_v23 }
 0x793   : > { %3274 = vst [vmem:[%s6332_s13 + $0x68] sm:$0xff] %v3258_v16 }
 0x794   : > { %4662 = shalt.err (!%p4659_p5)
}
 0x795   : > { %s4663_s24 = scalar_lea.hbm %s6352_s28, 2048  ;;  %s4667_s12 = scalar_lea.hbm %s6411_s5, 4096 }
 0x796   : > { %p4664_p4 = scmp.ne.s32.totalorder %s6352_s28, %s4663_s24  ;;  %p4668_p12 = scmp.lt.u32.totalorder %s6352_s28, %s6411_s5 }
 0x797   : > { %p4669_p1 = scmp.lt.u32.totalorder %s4667_s12, %s4663_s24  ;;  %p4671_p8 = scmp.lt.u32.totalorder %s4663_s24, %s6352_s28 }
 0x798   : > { %p4665_p7 = pnand %p4664_p4, %p6537_p9 }
 0x799   : > { %p4670_p3 = por %p4669_p1, %p4668_p12 }
 0x79a   : > { %p4666_p10 = pneg %p4665_p7 }
 0x79b   : > { %p4672_p11 = por %p4671_p8, %p4670_p3 }
 0x79d   : > { %p4673_p0 = pnand %p4672_p11, %p4666_p10 }
 0x79f   : > { %4676 = shalt.err (!%p4673_p0)
}
 0x7a0   : > { %s4742_s25 = smov 128   ;;  %s4743_s27 = smov 8  }
 0x7a1   : > { %4158 = dma.vmem_to_hbm [thread:$0]  (%p6537_p9), %s6354_s15, 2048, %s6352_s28, %s3278_s21, %s4742_s25, %s4742_s25, %s4743_s27  }
 0x7a2 PF: > { %s3306_s10 = sand.u32 1, %s4711_s18   ;;  %p6538_p6 = scmp.ne.s32.totalorder %s6456_s8, 0 }
 0x7a3   : > { %p6539_p13 = scmp.ge.s32.totalorder %s4731_s23, 2  ;;  %s3307_s14 = scalar_lea.sflag [#allocation5], %s3306_s10 }
 0x7a5   : > { %p4165_p2 = pnand %p6539_p13, %p6538_p6 }
 0x7a7   : > { %4706 = dma.done.wait (!%p4165_p2), %s3307_s14, 2048  }
 0x7a8   : > { %4708 = vsyncadd (!%p4165_p2), %s3307_s14, 4294965248  ;;  %s21_s23 = sadd.s32 1, %s4731_s23   ;;  %s6540_s18 = smov %s4715_s19 }
 0x7a9   : > { %p18_p5 = scmp.ge.s32.totalorder %s21_s23, 4   ;;  %s6541_s19 = smov %s4719_s20 }
 0x7aa   : > { %s6542_s20 = smov %s4830_s7  ;;  %s6543_s21 = smov %s4727_s22 }
 0x7ab   : > { %s6544_s22 = smov %s6546_s26  ;;  %20 = sbr.rel (!%p18_p5) target bundleno = 6 (0x6), region = 102 }
 0x7b2   :  { %3312 = vsyncpa [#allocation4], 1 }
 0x7b3   :  { %3314 = vsyncpa [#allocation4 + $0x1], 1 }
 0x7b4   :  { %3315 = vsyncpa [#allocation5], 1 }
 0x7b5   :  { %3317 = vsyncpa [#allocation5 + $0x1], 1 }

</bundles_post_ra>
